<compile_context>
chip_gen: v5e
topology: v5e:2x2
jax: 0.10.0
libtpu: 0.0.40
codegen_flags: <defaults>
</compile_context>

<pallas_src>
import functools

import jax
import jax.numpy as jnp
from jax.experimental import pallas as pl
from jax.experimental.pallas import tpu as pltpu

EPS = 1e-5          # InstanceNorm2d default eps
NEG_SLOPE = 0.2     # LeakyReLU slope


def _conv_enc_kernel(y_ref, w_ref, o_ref, acc_ref, s1_ref, s2_ref, *, hout, wout):
    # y_ref:   (Hout+1, 4*Cin, Wout+1)  bf16  space-to-depth input, one batch elem
    # w_ref:   (2, 2, Cout, 4*Cin)      bf16  rearranged conv weight
    # o_ref:   (Cout, Hout, Wout)       f32   NCHW output block
    # acc_ref: (Hout, Cout, Wout)       f32   conv result kept resident in VMEM
    # s1/s2:   (Cout, 1)                f32   running sum / sum-of-squares
    cout = o_ref.shape[0]

    # Scratch persists across grid steps -> re-init per batch element.
    s1_ref[...] = jnp.zeros_like(s1_ref)
    s2_ref[...] = jnp.zeros_like(s2_ref)

    # The 2x2 taps of the stride-1 conv in space-to-depth coordinates.
    w00 = w_ref[0, 0]          # (Cout, 4*Cin)
    w01 = w_ref[0, 1]
    w10 = w_ref[1, 0]
    w11 = w_ref[1, 1]

    @pl.loop(0, hout)
    def _(ho):
        r0 = y_ref[ho]         # (4*Cin, Wout+1) bf16
        r1 = y_ref[ho + 1]
        acc = jnp.dot(w00, r0[:, 0:wout], preferred_element_type=jnp.float32)
        acc = acc + jnp.dot(w01, r0[:, 1:wout + 1], preferred_element_type=jnp.float32)
        acc = acc + jnp.dot(w10, r1[:, 0:wout], preferred_element_type=jnp.float32)
        acc = acc + jnp.dot(w11, r1[:, 1:wout + 1], preferred_element_type=jnp.float32)
        acc_ref[ho] = acc                                      # (Cout, Wout) f32
        # Fused InstanceNorm statistics (single sweep over the conv result).
        s1_ref[...] += jnp.sum(acc, axis=1, keepdims=True)     # (Cout, 1)
        s2_ref[...] += jnp.sum(acc * acc, axis=1, keepdims=True)

    inv_count = 1.0 / float(hout * wout)
    mean = s1_ref[...] * inv_count                  # (Cout, 1)
    var = s2_ref[...] * inv_count - mean * mean     # biased variance
    scale = jax.lax.rsqrt(var + EPS)                # (Cout, 1)
    shift = -mean * scale

    # Normalize + LeakyReLU, emitting NCHW directly (per-channel tiles, all
    # static indexing).  Cout is small and static, so this loop is unrolled.
    for co in range(cout):
        ch = acc_ref[:, co, :]                              # (Hout, Wout) f32
        v = ch * scale[co:co + 1, :] + shift[co:co + 1, :]  # (1,1) broadcast
        o_ref[co] = jnp.where(v >= 0, v, NEG_SLOPE * v)


@jax.jit
def conv_enc_forward(x_nchw, weight_oihw, bias):
    """ConvEnc forward. x_nchw: (N, Cin, H, W) -> (N, Cout, H//2, W//2) (NCHW)."""
    n, cin, h, w = x_nchw.shape
    cout = weight_oihw.shape[0]
    # TODO(synk): odd H/W needs PyTorch's floor-based output-size handling;
    #             only even H/W is supported here (as in the original usage).
    assert h % 2 == 0 and w % 2 == 0
    hout, wout = h // 2, w // 2
    hp, wp = hout + 1, wout + 1
    c4 = 4 * cin
    del bias  # Cancels exactly under InstanceNorm2d(affine=False); see header.

    # Pad (p=1) + space-to-depth by the stride: ONE cheap XLA pass over x
    # (no 4x im2col expansion, no NHWC transpose of activations).
    # y[n, hh, (ph*2+pw)*Cin + ci, ww] = x_pad[n, ci, 2*hh+ph, 2*ww+pw]
    x_pad = jnp.pad(x_nchw.astype(jnp.float32), ((0, 0), (0, 0), (1, 1), (1, 1)))
    y = x_pad.reshape(n, cin, hp, 2, wp, 2)
    y = jnp.transpose(y, (0, 2, 3, 5, 1, 4))             # (N, Hp, ph, pw, Cin, Wp)
    y = y.reshape(n, hp, c4, wp).astype(jnp.bfloat16)

    # (Cout, Cin, 4, 4) -> (dh, dw, Cout, (ph*2+pw)*Cin + ci), kh=2*dh+ph, kw=2*dw+pw.
    w6 = weight_oihw.astype(jnp.float32).reshape(cout, cin, 2, 2, 2, 2)
    w2 = jnp.transpose(w6, (2, 4, 0, 3, 5, 1)).reshape(2, 2, cout, c4)
    w2 = w2.astype(jnp.bfloat16)

    kernel = functools.partial(_conv_enc_kernel, hout=hout, wout=wout)
    out = pl.pallas_call(
        kernel,
        out_shape=jax.ShapeDtypeStruct((n, cout, hout, wout), jnp.float32),
        grid_spec=pltpu.PrefetchScalarGridSpec(
            num_scalar_prefetch=0,
            grid=(n,),
            in_specs=[
                pl.BlockSpec((None, hp, c4, wp), lambda b: (b, 0, 0, 0)),
                pl.BlockSpec((2, 2, cout, c4), lambda b: (0, 0, 0, 0)),
            ],
            out_specs=pl.BlockSpec((None, cout, hout, wout), lambda b: (b, 0, 0, 0)),
            scratch_shapes=[
                pltpu.VMEM((hout, cout, wout), jnp.float32),   # conv result
                pltpu.VMEM((cout, 1), jnp.float32),            # sum
                pltpu.VMEM((cout, 1), jnp.float32),            # sum of squares
            ],
        ),
        compiler_params=pltpu.CompilerParams(
            dimension_semantics=("parallel",),
            vmem_limit_bytes=32 * 1024 * 1024,
        ),
    )(y, w2)
    return out                                               # NCHW, no transpose


def _reference_bf16(x_nchw, weight_oihw, bias):
    """Pure-JAX reference with matching bf16 conv-operand quantization."""
    xb = x_nchw.astype(jnp.bfloat16)
    wb = weight_oihw.astype(jnp.bfloat16)
    y = jax.lax.conv_general_dilated(
        xb, wb, window_strides=(2, 2), padding=((1, 1), (1, 1)),
        dimension_numbers=("NCHW", "OIHW", "NCHW"),
        preferred_element_type=jnp.float32)
    y = y + bias.reshape(1, -1, 1, 1).astype(jnp.float32)   # kept: cancels under IN
    mean = jnp.mean(y, axis=(2, 3), keepdims=True)
    var = jnp.mean((y - mean) ** 2, axis=(2, 3), keepdims=True)
    yn = (y - mean) * jax.lax.rsqrt(var + EPS)
    return jnp.where(yn >= 0, yn, NEG_SLOPE * yn)


def _reference_f32(x_nchw, weight_oihw, bias):
    """Full-f32 reference (module semantics, no bf16 quantization)."""
    y = jax.lax.conv_general_dilated(
        x_nchw.astype(jnp.float32), weight_oihw.astype(jnp.float32),
        window_strides=(2, 2), padding=((1, 1), (1, 1)),
        dimension_numbers=("NCHW", "OIHW", "NCHW"))
    y = y + bias.reshape(1, -1, 1, 1)
    mean = jnp.mean(y, axis=(2, 3), keepdims=True)
    var = jnp.mean((y - mean) ** 2, axis=(2, 3), keepdims=True)
    yn = (y - mean) * jax.lax.rsqrt(var + EPS)
    return jnp.where(yn >= 0, yn, NEG_SLOPE * yn)


if __name__ == "__main__":
    # Small shapes: batch=2, in_chan=4, out_chan=8, spatial=16x16.
    N, CIN, COUT, H, W = 2, 4, 8, 16, 16

    key = jax.random.PRNGKey(0)
    kx, kw, kb = jax.random.split(key, 3)
    x = jax.random.normal(kx, (N, CIN, H, W), dtype=jnp.float32)
    # nn.init.normal_(conv.weight, 0, 0.02)
    weight = 0.02 * jax.random.normal(kw, (COUT, CIN, 4, 4), dtype=jnp.float32)
    # Conv2d default bias init: U(-1/sqrt(fan_in), 1/sqrt(fan_in)), fan_in = CIN*4*4
    bound = 1.0 / jnp.sqrt(jnp.float32(CIN * 4 * 4))
    bias = jax.random.uniform(kb, (COUT,), minval=-bound, maxval=bound,
                              dtype=jnp.float32)

    out = conv_enc_forward(x, weight, bias)
    jax.block_until_ready(out)
    assert out.shape == (N, COUT, H // 2, W // 2)

    ref_b = _reference_bf16(x, weight, bias)
    assert jnp.allclose(out, ref_b, atol=1e-3, rtol=1e-3), \
        "mismatch vs bf16-quantized JAX reference"

    ref_f = _reference_f32(x, weight, bias)
    assert jnp.allclose(out, ref_f, atol=1e-1, rtol=1e-1), \
        "mismatch vs full-f32 JAX reference"

    print("KERNEL_OK")
</pallas_src>

<mosaic_0001>
module attributes {stable_mosaic.version = 11 : i64} {
  func.func @_conv_enc_kernel(%arg0: i32, %arg1: memref<1x9x16x9xbf16, #tpu.memory_space<vmem>>, %arg2: memref<2x2x8x16xbf16, #tpu.memory_space<vmem>>, %arg3: memref<1x8x8x8xf32, #tpu.memory_space<vmem>>, %arg4: memref<8x8x8xf32, #tpu.memory_space<vmem>>, %arg5: memref<8x1xf32, #tpu.memory_space<vmem>>, %arg6: memref<8x1xf32, #tpu.memory_space<vmem>>) attributes {dimension_semantics = [#tpu.dimension_semantics<parallel>], iteration_bounds = array<i64: 2>, scalar_prefetch = 0 : i64, scratch_operands = 3 : i64, tpu.core_type = #tpu.core_type<tc>, window_params = [{transform_indices = @transform_0, window_bounds = array<i64: 1, 9, 16, 9>}, {pipeline_mode = #tpu.pipeline_mode<synchronous>, transform_indices = @transform_1, window_bounds = array<i64: 2, 2, 8, 16>}, {transform_indices = @transform_2, window_bounds = array<i64: 1, 8, 8, 8>}]} {
    %cst = arith.constant 0.000000e+00 : f32
    %0 = vector.broadcast %cst : f32 to vector<8x1xf32>
    %c0 = arith.constant 0 : index
    %c0_0 = arith.constant 0 : index
    %1 = vector.load %arg5[%c0, %c0_0] : memref<8x1xf32, #tpu.memory_space<vmem>>, vector<8x1xf32>
    tpu.vector_store %arg5[%c0, %c0_0], %0 {strides = array<i32>} : memref<8x1xf32, #tpu.memory_space<vmem>>, vector<8x1xf32>,
    %cst_1 = arith.constant 0.000000e+00 : f32
    %2 = vector.broadcast %cst_1 : f32 to vector<8x1xf32>
    %c0_2 = arith.constant 0 : index
    %c0_3 = arith.constant 0 : index
    %3 = vector.load %arg6[%c0_2, %c0_3] : memref<8x1xf32, #tpu.memory_space<vmem>>, vector<8x1xf32>
    tpu.vector_store %arg6[%c0_2, %c0_3], %2 {strides = array<i32>} : memref<8x1xf32, #tpu.memory_space<vmem>>, vector<8x1xf32>,
    %c0_4 = arith.constant 0 : index
    %c0_5 = arith.constant 0 : index
    %c0_6 = arith.constant 0 : index
    %c0_7 = arith.constant 0 : index
    %4 = vector.load %arg2[%c0_4, %c0_5, %c0_6, %c0_7] : memref<2x2x8x16xbf16, #tpu.memory_space<vmem>>, vector<1x1x8x16xbf16>
    %5 = vector.shape_cast %4 : vector<1x1x8x16xbf16> to vector<8x16xbf16>
    %c0_8 = arith.constant 0 : index
    %c1 = arith.constant 1 : index
    %c0_9 = arith.constant 0 : index
    %c0_10 = arith.constant 0 : index
    %6 = vector.load %arg2[%c0_8, %c1, %c0_9, %c0_10] : memref<2x2x8x16xbf16, #tpu.memory_space<vmem>>, vector<1x1x8x16xbf16>
    %7 = vector.shape_cast %6 : vector<1x1x8x16xbf16> to vector<8x16xbf16>
    %c1_11 = arith.constant 1 : index
    %c0_12 = arith.constant 0 : index
    %c0_13 = arith.constant 0 : index
    %c0_14 = arith.constant 0 : index
    %8 = vector.load %arg2[%c1_11, %c0_12, %c0_13, %c0_14] : memref<2x2x8x16xbf16, #tpu.memory_space<vmem>>, vector<1x1x8x16xbf16>
    %9 = vector.shape_cast %8 : vector<1x1x8x16xbf16> to vector<8x16xbf16>
    %c1_15 = arith.constant 1 : index
    %c1_16 = arith.constant 1 : index
    %c0_17 = arith.constant 0 : index
    %c0_18 = arith.constant 0 : index
    %10 = vector.load %arg2[%c1_15, %c1_16, %c0_17, %c0_18] : memref<2x2x8x16xbf16, #tpu.memory_space<vmem>>, vector<1x1x8x16xbf16>
    %11 = vector.shape_cast %10 : vector<1x1x8x16xbf16> to vector<8x16xbf16>
    %c0_i32 = arith.constant 0 : i32
    %c8_i32 = arith.constant 8 : i32
    %12 = arith.addi %c0_i32, %c8_i32 : i32
    %c1_i32 = arith.constant 1 : i32
    scf.for %arg7 = %c0_i32 to %12 step %c1_i32  : i32 {
      %c1_i32_94 = arith.constant 1 : i32
      %155 = arith.muli %arg7, %c1_i32_94 : i32
      %c0_i32_95 = arith.constant 0 : i32
      %156 = arith.addi %c0_i32_95, %155 : i32
      %c0_96 = arith.constant 0 : index
      %157 = arith.index_cast %156 : i32 to index
      %c0_97 = arith.constant 0 : index
      %c0_98 = arith.constant 0 : index
      %158 = vector.load %arg1[%c0_96, %157, %c0_97, %c0_98] : memref<1x9x16x9xbf16, #tpu.memory_space<vmem>>, vector<1x1x16x9xbf16>
      %159 = vector.shape_cast %158 : vector<1x1x16x9xbf16> to vector<16x9xbf16>
      %c1_i32_99 = arith.constant 1 : i32
      %160 = arith.addi %156, %c1_i32_99 : i32
      %c0_100 = arith.constant 0 : index
      %161 = arith.index_cast %160 : i32 to index
      %c0_101 = arith.constant 0 : index
      %c0_102 = arith.constant 0 : index
      %162 = vector.load %arg1[%c0_100, %161, %c0_101, %c0_102] : memref<1x9x16x9xbf16, #tpu.memory_space<vmem>>, vector<1x1x16x9xbf16>
      %163 = vector.shape_cast %162 : vector<1x1x16x9xbf16> to vector<16x9xbf16>
      %164 = vector.extract_strided_slice %159 {offsets = [0, 0], sizes = [16, 8], strides = [1, 1]} : vector<16x9xbf16> to vector<16x8xbf16>
      %cst_103 = arith.constant dense<0.000000e+00> : vector<8x8xf32>
      %165 = tpu.matmul %5, %164, %cst_103 {dimension_numbers = #tpu.dot_dimension_numbers<[1], [0], [0], [1], [0, 0, 1, 1], [], []>} : vector<8x16xbf16>, vector<16x8xbf16>, vector<8x8xf32> -> vector<8x8xf32>
      %166 = vector.extract_strided_slice %159 {offsets = [0, 1], sizes = [16, 8], strides = [1, 1]} : vector<16x9xbf16> to vector<16x8xbf16>
      %cst_104 = arith.constant dense<0.000000e+00> : vector<8x8xf32>
      %167 = tpu.matmul %7, %166, %cst_104 {dimension_numbers = #tpu.dot_dimension_numbers<[1], [0], [0], [1], [0, 0, 1, 1], [], []>} : vector<8x16xbf16>, vector<16x8xbf16>, vector<8x8xf32> -> vector<8x8xf32>
      %168 = arith.addf %165, %167 : vector<8x8xf32>
      %169 = vector.extract_strided_slice %163 {offsets = [0, 0], sizes = [16, 8], strides = [1, 1]} : vector<16x9xbf16> to vector<16x8xbf16>
      %cst_105 = arith.constant dense<0.000000e+00> : vector<8x8xf32>
      %170 = tpu.matmul %9, %169, %cst_105 {dimension_numbers = #tpu.dot_dimension_numbers<[1], [0], [0], [1], [0, 0, 1, 1], [], []>} : vector<8x16xbf16>, vector<16x8xbf16>, vector<8x8xf32> -> vector<8x8xf32>
      %171 = arith.addf %168, %170 : vector<8x8xf32>
      %172 = vector.extract_strided_slice %163 {offsets = [0, 1], sizes = [16, 8], strides = [1, 1]} : vector<16x9xbf16> to vector<16x8xbf16>
      %cst_106 = arith.constant dense<0.000000e+00> : vector<8x8xf32>
      %173 = tpu.matmul %11, %172, %cst_106 {dimension_numbers = #tpu.dot_dimension_numbers<[1], [0], [0], [1], [0, 0, 1, 1], [], []>} : vector<8x16xbf16>, vector<16x8xbf16>, vector<8x8xf32> -> vector<8x8xf32>
      %174 = arith.addf %171, %173 : vector<8x8xf32>
      %175 = arith.index_cast %156 : i32 to index
      %c0_107 = arith.constant 0 : index
      %c0_108 = arith.constant 0 : index
      %176 = vector.load %arg4[%175, %c0_107, %c0_108] : memref<8x8x8xf32, #tpu.memory_space<vmem>>, vector<1x8x8xf32>
      %177 = vector.shape_cast %176 : vector<1x8x8xf32> to vector<8x8xf32>
      %178 = vector.shape_cast %174 : vector<8x8xf32> to vector<1x8x8xf32>
      tpu.vector_store %arg4[%175, %c0_107, %c0_108], %178 {strides = array<i32>} : memref<8x8x8xf32, #tpu.memory_space<vmem>>, vector<1x8x8xf32>,
      %c0_109 = arith.constant 0 : index
      %c0_110 = arith.constant 0 : index
      %179 = vector.load %arg5[%c0_109, %c0_110] : memref<8x1xf32, #tpu.memory_space<vmem>>, vector<8x1xf32>
      %cst_111 = arith.constant dense<0.000000e+00> : vector<8xf32>
      %180 = vector.multi_reduction <add>, %174, %cst_111 [1] : vector<8x8xf32> to vector<8xf32>
      %181 = vector.shape_cast %180 : vector<8xf32> to vector<8x1xf32>
      %182 = arith.addf %179, %181 : vector<8x1xf32>
      %c0_112 = arith.constant 0 : index
      %c0_113 = arith.constant 0 : index
      %183 = vector.load %arg5[%c0_112, %c0_113] : memref<8x1xf32, #tpu.memory_space<vmem>>, vector<8x1xf32>
      tpu.vector_store %arg5[%c0_112, %c0_113], %182 {strides = array<i32>} : memref<8x1xf32, #tpu.memory_space<vmem>>, vector<8x1xf32>,
      %c0_114 = arith.constant 0 : index
      %c0_115 = arith.constant 0 : index
      %184 = vector.load %arg6[%c0_114, %c0_115] : memref<8x1xf32, #tpu.memory_space<vmem>>, vector<8x1xf32>
      %185 = arith.mulf %174, %174 : vector<8x8xf32>
      %cst_116 = arith.constant dense<0.000000e+00> : vector<8xf32>
      %186 = vector.multi_reduction <add>, %185, %cst_116 [1] : vector<8x8xf32> to vector<8xf32>
      %187 = vector.shape_cast %186 : vector<8xf32> to vector<8x1xf32>
      %188 = arith.addf %184, %187 : vector<8x1xf32>
      %c0_117 = arith.constant 0 : index
      %c0_118 = arith.constant 0 : index
      %189 = vector.load %arg6[%c0_117, %c0_118] : memref<8x1xf32, #tpu.memory_space<vmem>>, vector<8x1xf32>
      tpu.vector_store %arg6[%c0_117, %c0_118], %188 {strides = array<i32>} : memref<8x1xf32, #tpu.memory_space<vmem>>, vector<8x1xf32>,
    }
    %c8_i32_19 = arith.constant 8 : i32
    %c0_20 = arith.constant 0 : index
    %c0_21 = arith.constant 0 : index
    %13 = vector.load %arg5[%c0_20, %c0_21] : memref<8x1xf32, #tpu.memory_space<vmem>>, vector<8x1xf32>
    %cst_22 = arith.constant 1.562500e-02 : f32
    %14 = vector.broadcast %cst_22 : f32 to vector<8x1xf32>
    %15 = arith.mulf %13, %14 : vector<8x1xf32>
    %c0_23 = arith.constant 0 : index
    %c0_24 = arith.constant 0 : index
    %16 = vector.load %arg6[%c0_23, %c0_24] : memref<8x1xf32, #tpu.memory_space<vmem>>, vector<8x1xf32>
    %cst_25 = arith.constant 1.562500e-02 : f32
    %17 = vector.broadcast %cst_25 : f32 to vector<8x1xf32>
    %18 = arith.mulf %16, %17 : vector<8x1xf32>
    %19 = arith.mulf %15, %15 : vector<8x1xf32>
    %20 = arith.subf %18, %19 : vector<8x1xf32>
    %cst_26 = arith.constant 9.99999974E-6 : f32
    %21 = vector.broadcast %cst_26 : f32 to vector<8x1xf32>
    %22 = arith.addf %20, %21 : vector<8x1xf32>
    %23 = math.rsqrt %22 : vector<8x1xf32>
    %cst_27 = arith.constant 0.000000e+00 : f32
    %24 = vector.broadcast %cst_27 : f32 to vector<8x1xf32>
    %25 = arith.subf %24, %15 : vector<8x1xf32>
    %26 = arith.mulf %25, %23 : vector<8x1xf32>
    %c0_28 = arith.constant 0 : index
    %c0_29 = arith.constant 0 : index
    %c0_30 = arith.constant 0 : index
    %27 = vector.load %arg4[%c0_28, %c0_29, %c0_30] : memref<8x8x8xf32, #tpu.memory_space<vmem>>, vector<8x1x8xf32>
    %28 = vector.shape_cast %27 : vector<8x1x8xf32> to vector<8x8xf32>
    %29 = vector.extract_strided_slice %23 {offsets = [0, 0], sizes = [1, 1], strides = [1, 1]} : vector<8x1xf32> to vector<1x1xf32>
    %30 = vector.broadcast %29 : vector<1x1xf32> to vector<8x8xf32>
    %31 = arith.mulf %28, %30 : vector<8x8xf32>
    %32 = vector.extract_strided_slice %26 {offsets = [0, 0], sizes = [1, 1], strides = [1, 1]} : vector<8x1xf32> to vector<1x1xf32>
    %33 = vector.broadcast %32 : vector<1x1xf32> to vector<8x8xf32>
    %34 = arith.addf %31, %33 : vector<8x8xf32>
    %cst_31 = arith.constant 0.000000e+00 : f32
    %35 = vector.broadcast %cst_31 : f32 to vector<8x8xf32>
    %36 = arith.cmpf oge, %34, %35 : vector<8x8xf32>
    %cst_32 = arith.constant 2.000000e-01 : f32
    %37 = vector.broadcast %cst_32 : f32 to vector<8x8xf32>
    %38 = arith.mulf %37, %34 : vector<8x8xf32>
    %39 = arith.select %36, %34, %38 : vector<8x8xi1>, vector<8x8xf32>
    %c0_33 = arith.constant 0 : index
    %c0_34 = arith.constant 0 : index
    %c0_35 = arith.constant 0 : index
    %c0_36 = arith.constant 0 : index
    %40 = vector.load %arg3[%c0_33, %c0_34, %c0_35, %c0_36] : memref<1x8x8x8xf32, #tpu.memory_space<vmem>>, vector<1x1x8x8xf32>
    %41 = vector.shape_cast %40 : vector<1x1x8x8xf32> to vector<8x8xf32>
    %42 = vector.shape_cast %39 : vector<8x8xf32> to vector<1x1x8x8xf32>
    tpu.vector_store %arg3[%c0_33, %c0_34, %c0_35, %c0_36], %42 {strides = array<i32>} : memref<1x8x8x8xf32, #tpu.memory_space<vmem>>, vector<1x1x8x8xf32>,
    %c0_37 = arith.constant 0 : index
    %c1_38 = arith.constant 1 : index
    %c0_39 = arith.constant 0 : index
    %43 = vector.load %arg4[%c0_37, %c1_38, %c0_39] : memref<8x8x8xf32, #tpu.memory_space<vmem>>, vector<8x1x8xf32>
    %44 = vector.shape_cast %43 : vector<8x1x8xf32> to vector<8x8xf32>
    %45 = vector.extract_strided_slice %23 {offsets = [1, 0], sizes = [1, 1], strides = [1, 1]} : vector<8x1xf32> to vector<1x1xf32>
    %46 = vector.broadcast %45 : vector<1x1xf32> to vector<8x8xf32>
    %47 = arith.mulf %44, %46 : vector<8x8xf32>
    %48 = vector.extract_strided_slice %26 {offsets = [1, 0], sizes = [1, 1], strides = [1, 1]} : vector<8x1xf32> to vector<1x1xf32>
    %49 = vector.broadcast %48 : vector<1x1xf32> to vector<8x8xf32>
    %50 = arith.addf %47, %49 : vector<8x8xf32>
    %cst_40 = arith.constant 0.000000e+00 : f32
    %51 = vector.broadcast %cst_40 : f32 to vector<8x8xf32>
    %52 = arith.cmpf oge, %50, %51 : vector<8x8xf32>
    %cst_41 = arith.constant 2.000000e-01 : f32
    %53 = vector.broadcast %cst_41 : f32 to vector<8x8xf32>
    %54 = arith.mulf %53, %50 : vector<8x8xf32>
    %55 = arith.select %52, %50, %54 : vector<8x8xi1>, vector<8x8xf32>
    %c0_42 = arith.constant 0 : index
    %c1_43 = arith.constant 1 : index
    %c0_44 = arith.constant 0 : index
    %c0_45 = arith.constant 0 : index
    %56 = vector.load %arg3[%c0_42, %c1_43, %c0_44, %c0_45] : memref<1x8x8x8xf32, #tpu.memory_space<vmem>>, vector<1x1x8x8xf32>
    %57 = vector.shape_cast %56 : vector<1x1x8x8xf32> to vector<8x8xf32>
    %58 = vector.shape_cast %55 : vector<8x8xf32> to vector<1x1x8x8xf32>
    tpu.vector_store %arg3[%c0_42, %c1_43, %c0_44, %c0_45], %58 {strides = array<i32>} : memref<1x8x8x8xf32, #tpu.memory_space<vmem>>, vector<1x1x8x8xf32>,
    %c0_46 = arith.constant 0 : index
    %c2 = arith.constant 2 : index
    %c0_47 = arith.constant 0 : index
    %59 = vector.load %arg4[%c0_46, %c2, %c0_47] : memref<8x8x8xf32, #tpu.memory_space<vmem>>, vector<8x1x8xf32>
    %60 = vector.shape_cast %59 : vector<8x1x8xf32> to vector<8x8xf32>
    %61 = vector.extract_strided_slice %23 {offsets = [2, 0], sizes = [1, 1], strides = [1, 1]} : vector<8x1xf32> to vector<1x1xf32>
    %62 = vector.broadcast %61 : vector<1x1xf32> to vector<8x8xf32>
    %63 = arith.mulf %60, %62 : vector<8x8xf32>
    %64 = vector.extract_strided_slice %26 {offsets = [2, 0], sizes = [1, 1], strides = [1, 1]} : vector<8x1xf32> to vector<1x1xf32>
    %65 = vector.broadcast %64 : vector<1x1xf32> to vector<8x8xf32>
    %66 = arith.addf %63, %65 : vector<8x8xf32>
    %cst_48 = arith.constant 0.000000e+00 : f32
    %67 = vector.broadcast %cst_48 : f32 to vector<8x8xf32>
    %68 = arith.cmpf oge, %66, %67 : vector<8x8xf32>
    %cst_49 = arith.constant 2.000000e-01 : f32
    %69 = vector.broadcast %cst_49 : f32 to vector<8x8xf32>
    %70 = arith.mulf %69, %66 : vector<8x8xf32>
    %71 = arith.select %68, %66, %70 : vector<8x8xi1>, vector<8x8xf32>
    %c0_50 = arith.constant 0 : index
    %c2_51 = arith.constant 2 : index
    %c0_52 = arith.constant 0 : index
    %c0_53 = arith.constant 0 : index
    %72 = vector.load %arg3[%c0_50, %c2_51, %c0_52, %c0_53] : memref<1x8x8x8xf32, #tpu.memory_space<vmem>>, vector<1x1x8x8xf32>
    %73 = vector.shape_cast %72 : vector<1x1x8x8xf32> to vector<8x8xf32>
    %74 = vector.shape_cast %71 : vector<8x8xf32> to vector<1x1x8x8xf32>
    tpu.vector_store %arg3[%c0_50, %c2_51, %c0_52, %c0_53], %74 {strides = array<i32>} : memref<1x8x8x8xf32, #tpu.memory_space<vmem>>, vector<1x1x8x8xf32>,
    %c0_54 = arith.constant 0 : index
    %c3 = arith.constant 3 : index
    %c0_55 = arith.constant 0 : index
    %75 = vector.load %arg4[%c0_54, %c3, %c0_55] : memref<8x8x8xf32, #tpu.memory_space<vmem>>, vector<8x1x8xf32>
    %76 = vector.shape_cast %75 : vector<8x1x8xf32> to vector<8x8xf32>
    %77 = vector.extract_strided_slice %23 {offsets = [3, 0], sizes = [1, 1], strides = [1, 1]} : vector<8x1xf32> to vector<1x1xf32>
    %78 = vector.broadcast %77 : vector<1x1xf32> to vector<8x8xf32>
    %79 = arith.mulf %76, %78 : vector<8x8xf32>
    %80 = vector.extract_strided_slice %26 {offsets = [3, 0], sizes = [1, 1], strides = [1, 1]} : vector<8x1xf32> to vector<1x1xf32>
    %81 = vector.broadcast %80 : vector<1x1xf32> to vector<8x8xf32>
    %82 = arith.addf %79, %81 : vector<8x8xf32>
    %cst_56 = arith.constant 0.000000e+00 : f32
    %83 = vector.broadcast %cst_56 : f32 to vector<8x8xf32>
    %84 = arith.cmpf oge, %82, %83 : vector<8x8xf32>
    %cst_57 = arith.constant 2.000000e-01 : f32
    %85 = vector.broadcast %cst_57 : f32 to vector<8x8xf32>
    %86 = arith.mulf %85, %82 : vector<8x8xf32>
    %87 = arith.select %84, %82, %86 : vector<8x8xi1>, vector<8x8xf32>
    %c0_58 = arith.constant 0 : index
    %c3_59 = arith.constant 3 : index
    %c0_60 = arith.constant 0 : index
    %c0_61 = arith.constant 0 : index
    %88 = vector.load %arg3[%c0_58, %c3_59, %c0_60, %c0_61] : memref<1x8x8x8xf32, #tpu.memory_space<vmem>>, vector<1x1x8x8xf32>
    %89 = vector.shape_cast %88 : vector<1x1x8x8xf32> to vector<8x8xf32>
    %90 = vector.shape_cast %87 : vector<8x8xf32> to vector<1x1x8x8xf32>
    tpu.vector_store %arg3[%c0_58, %c3_59, %c0_60, %c0_61], %90 {strides = array<i32>} : memref<1x8x8x8xf32, #tpu.memory_space<vmem>>, vector<1x1x8x8xf32>,
    %c0_62 = arith.constant 0 : index
    %c4 = arith.constant 4 : index
    %c0_63 = arith.constant 0 : index
    %91 = vector.load %arg4[%c0_62, %c4, %c0_63] : memref<8x8x8xf32, #tpu.memory_space<vmem>>, vector<8x1x8xf32>
    %92 = vector.shape_cast %91 : vector<8x1x8xf32> to vector<8x8xf32>
    %93 = vector.extract_strided_slice %23 {offsets = [4, 0], sizes = [1, 1], strides = [1, 1]} : vector<8x1xf32> to vector<1x1xf32>
    %94 = vector.broadcast %93 : vector<1x1xf32> to vector<8x8xf32>
    %95 = arith.mulf %92, %94 : vector<8x8xf32>
    %96 = vector.extract_strided_slice %26 {offsets = [4, 0], sizes = [1, 1], strides = [1, 1]} : vector<8x1xf32> to vector<1x1xf32>
    %97 = vector.broadcast %96 : vector<1x1xf32> to vector<8x8xf32>
    %98 = arith.addf %95, %97 : vector<8x8xf32>
    %cst_64 = arith.constant 0.000000e+00 : f32
    %99 = vector.broadcast %cst_64 : f32 to vector<8x8xf32>
    %100 = arith.cmpf oge, %98, %99 : vector<8x8xf32>
    %cst_65 = arith.constant 2.000000e-01 : f32
    %101 = vector.broadcast %cst_65 : f32 to vector<8x8xf32>
    %102 = arith.mulf %101, %98 : vector<8x8xf32>
    %103 = arith.select %100, %98, %102 : vector<8x8xi1>, vector<8x8xf32>
    %c0_66 = arith.constant 0 : index
    %c4_67 = arith.constant 4 : index
    %c0_68 = arith.constant 0 : index
    %c0_69 = arith.constant 0 : index
    %104 = vector.load %arg3[%c0_66, %c4_67, %c0_68, %c0_69] : memref<1x8x8x8xf32, #tpu.memory_space<vmem>>, vector<1x1x8x8xf32>
    %105 = vector.shape_cast %104 : vector<1x1x8x8xf32> to vector<8x8xf32>
    %106 = vector.shape_cast %103 : vector<8x8xf32> to vector<1x1x8x8xf32>
    tpu.vector_store %arg3[%c0_66, %c4_67, %c0_68, %c0_69], %106 {strides = array<i32>} : memref<1x8x8x8xf32, #tpu.memory_space<vmem>>, vector<1x1x8x8xf32>,
    %c0_70 = arith.constant 0 : index
    %c5 = arith.constant 5 : index
    %c0_71 = arith.constant 0 : index
    %107 = vector.load %arg4[%c0_70, %c5, %c0_71] : memref<8x8x8xf32, #tpu.memory_space<vmem>>, vector<8x1x8xf32>
    %108 = vector.shape_cast %107 : vector<8x1x8xf32> to vector<8x8xf32>
    %109 = vector.extract_strided_slice %23 {offsets = [5, 0], sizes = [1, 1], strides = [1, 1]} : vector<8x1xf32> to vector<1x1xf32>
    %110 = vector.broadcast %109 : vector<1x1xf32> to vector<8x8xf32>
    %111 = arith.mulf %108, %110 : vector<8x8xf32>
    %112 = vector.extract_strided_slice %26 {offsets = [5, 0], sizes = [1, 1], strides = [1, 1]} : vector<8x1xf32> to vector<1x1xf32>
    %113 = vector.broadcast %112 : vector<1x1xf32> to vector<8x8xf32>
    %114 = arith.addf %111, %113 : vector<8x8xf32>
    %cst_72 = arith.constant 0.000000e+00 : f32
    %115 = vector.broadcast %cst_72 : f32 to vector<8x8xf32>
    %116 = arith.cmpf oge, %114, %115 : vector<8x8xf32>
    %cst_73 = arith.constant 2.000000e-01 : f32
    %117 = vector.broadcast %cst_73 : f32 to vector<8x8xf32>
    %118 = arith.mulf %117, %114 : vector<8x8xf32>
    %119 = arith.select %116, %114, %118 : vector<8x8xi1>, vector<8x8xf32>
    %c0_74 = arith.constant 0 : index
    %c5_75 = arith.constant 5 : index
    %c0_76 = arith.constant 0 : index
    %c0_77 = arith.constant 0 : index
    %120 = vector.load %arg3[%c0_74, %c5_75, %c0_76, %c0_77] : memref<1x8x8x8xf32, #tpu.memory_space<vmem>>, vector<1x1x8x8xf32>
    %121 = vector.shape_cast %120 : vector<1x1x8x8xf32> to vector<8x8xf32>
    %122 = vector.shape_cast %119 : vector<8x8xf32> to vector<1x1x8x8xf32>
    tpu.vector_store %arg3[%c0_74, %c5_75, %c0_76, %c0_77], %122 {strides = array<i32>} : memref<1x8x8x8xf32, #tpu.memory_space<vmem>>, vector<1x1x8x8xf32>,
    %c0_78 = arith.constant 0 : index
    %c6 = arith.constant 6 : index
    %c0_79 = arith.constant 0 : index
    %123 = vector.load %arg4[%c0_78, %c6, %c0_79] : memref<8x8x8xf32, #tpu.memory_space<vmem>>, vector<8x1x8xf32>
    %124 = vector.shape_cast %123 : vector<8x1x8xf32> to vector<8x8xf32>
    %125 = vector.extract_strided_slice %23 {offsets = [6, 0], sizes = [1, 1], strides = [1, 1]} : vector<8x1xf32> to vector<1x1xf32>
    %126 = vector.broadcast %125 : vector<1x1xf32> to vector<8x8xf32>
    %127 = arith.mulf %124, %126 : vector<8x8xf32>
    %128 = vector.extract_strided_slice %26 {offsets = [6, 0], sizes = [1, 1], strides = [1, 1]} : vector<8x1xf32> to vector<1x1xf32>
    %129 = vector.broadcast %128 : vector<1x1xf32> to vector<8x8xf32>
    %130 = arith.addf %127, %129 : vector<8x8xf32>
    %cst_80 = arith.constant 0.000000e+00 : f32
    %131 = vector.broadcast %cst_80 : f32 to vector<8x8xf32>
    %132 = arith.cmpf oge, %130, %131 : vector<8x8xf32>
    %cst_81 = arith.constant 2.000000e-01 : f32
    %133 = vector.broadcast %cst_81 : f32 to vector<8x8xf32>
    %134 = arith.mulf %133, %130 : vector<8x8xf32>
    %135 = arith.select %132, %130, %134 : vector<8x8xi1>, vector<8x8xf32>
    %c0_82 = arith.constant 0 : index
    %c6_83 = arith.constant 6 : index
    %c0_84 = arith.constant 0 : index
    %c0_85 = arith.constant 0 : index
    %136 = vector.load %arg3[%c0_82, %c6_83, %c0_84, %c0_85] : memref<1x8x8x8xf32, #tpu.memory_space<vmem>>, vector<1x1x8x8xf32>
    %137 = vector.shape_cast %136 : vector<1x1x8x8xf32> to vector<8x8xf32>
    %138 = vector.shape_cast %135 : vector<8x8xf32> to vector<1x1x8x8xf32>
    tpu.vector_store %arg3[%c0_82, %c6_83, %c0_84, %c0_85], %138 {strides = array<i32>} : memref<1x8x8x8xf32, #tpu.memory_space<vmem>>, vector<1x1x8x8xf32>,
    %c0_86 = arith.constant 0 : index
    %c7 = arith.constant 7 : index
    %c0_87 = arith.constant 0 : index
    %139 = vector.load %arg4[%c0_86, %c7, %c0_87] : memref<8x8x8xf32, #tpu.memory_space<vmem>>, vector<8x1x8xf32>
    %140 = vector.shape_cast %139 : vector<8x1x8xf32> to vector<8x8xf32>
    %141 = vector.extract_strided_slice %23 {offsets = [7, 0], sizes = [1, 1], strides = [1, 1]} : vector<8x1xf32> to vector<1x1xf32>
    %142 = vector.broadcast %141 : vector<1x1xf32> to vector<8x8xf32>
    %143 = arith.mulf %140, %142 : vector<8x8xf32>
    %144 = vector.extract_strided_slice %26 {offsets = [7, 0], sizes = [1, 1], strides = [1, 1]} : vector<8x1xf32> to vector<1x1xf32>
    %145 = vector.broadcast %144 : vector<1x1xf32> to vector<8x8xf32>
    %146 = arith.addf %143, %145 : vector<8x8xf32>
    %cst_88 = arith.constant 0.000000e+00 : f32
    %147 = vector.broadcast %cst_88 : f32 to vector<8x8xf32>
    %148 = arith.cmpf oge, %146, %147 : vector<8x8xf32>
    %cst_89 = arith.constant 2.000000e-01 : f32
    %149 = vector.broadcast %cst_89 : f32 to vector<8x8xf32>
    %150 = arith.mulf %149, %146 : vector<8x8xf32>
    %151 = arith.select %148, %146, %150 : vector<8x8xi1>, vector<8x8xf32>
    %c0_90 = arith.constant 0 : index
    %c7_91 = arith.constant 7 : index
    %c0_92 = arith.constant 0 : index
    %c0_93 = arith.constant 0 : index
    %152 = vector.load %arg3[%c0_90, %c7_91, %c0_92, %c0_93] : memref<1x8x8x8xf32, #tpu.memory_space<vmem>>, vector<1x1x8x8xf32>
    %153 = vector.shape_cast %152 : vector<1x1x8x8xf32> to vector<8x8xf32>
    %154 = vector.shape_cast %151 : vector<8x8xf32> to vector<1x1x8x8xf32>
    tpu.vector_store %arg3[%c0_90, %c7_91, %c0_92, %c0_93], %154 {strides = array<i32>} : memref<1x8x8x8xf32, #tpu.memory_space<vmem>>, vector<1x1x8x8xf32>,
    return
  }
  func.func @transform_0(%arg0: i32) -> (i32, i32, i32, i32) {
    %c0_i32 = arith.constant 0 : i32
    %c0_i32_0 = arith.constant 0 : i32
    %c0_i32_1 = arith.constant 0 : i32
    %c0_i32_2 = arith.constant 0 : i32
    return %arg0, %c0_i32, %c0_i32_0, %c0_i32_1 : i32, i32, i32, i32
  }
  func.func @transform_1(%arg0: i32) -> (i32, i32, i32, i32) {
    %c0_i32 = arith.constant 0 : i32
    %c0_i32_0 = arith.constant 0 : i32
    %c0_i32_1 = arith.constant 0 : i32
    %c0_i32_2 = arith.constant 0 : i32
    %c0_i32_3 = arith.constant 0 : i32
    return %c0_i32, %c0_i32_0, %c0_i32_1, %c0_i32_2 : i32, i32, i32, i32
  }
  func.func @transform_2(%arg0: i32) -> (i32, i32, i32, i32) {
    %c0_i32 = arith.constant 0 : i32
    %c0_i32_0 = arith.constant 0 : i32
    %c0_i32_1 = arith.constant 0 : i32
    %c0_i32_2 = arith.constant 0 : i32
    return %arg0, %c0_i32, %c0_i32_0, %c0_i32_1 : i32, i32, i32, i32
  }
}

</mosaic_0001>

<bundles_post_ra>
// kernel: conv_enc_forward.1
= control target key start
LH: loop header
LB: loop body
LE: loop exit
PB: predicated region body
PF: predicated region fallthrough
CT: control target
= control target key end

     0   :  { %7 = vsyncpa [#allocation6], 0  ;;  %s1583_s0 = inlined_call_operand.vmem [shape: bf16[2,9,16,9], index: 0, kind: input, shape index: {}]   ;;  %s1584_s1 = inlined_call_operand.vmem [shape: bf16[2,2,8,16], index: 1, kind: input, shape index: {}]   ;;  %s1585_s2 = inlined_call_operand.hbm [shape: f32[2,8,8,8], index: 2, kind: output, shape index: {}]  }
   0x1   :  { %9 = vsyncpa [#allocation6 + $0x1], 0  ;;  %s1256_s9 = smov 0   ;;  %s1258_s10 = smov 0  }
   0x2   :  { %s1260_s11 = smov 0   ;;  %s1262_s12 = smov 0  }
   0x3 LB: > { %s1277_s13 = sadd.s32 4294967295, %s1231_s12   ;;  %s1036_s14 = sadd.s32 4294967294, %s1231_s12   ;;  %s1231_s12 = sphi %s1262_s12, %s1591_s12   ;;  %s1227_s11 = sphi %s1260_s11, %s1590_s11   ;;  %s1223_s10 = sphi %s1258_s10, %s1589_s10   ;;  %s1219_s9 = sphi %s1256_s9, %s1588_s9  }
   0x4   : > { %s1281_s15 = sadd.s32 1, %s1231_s12   ;;  %s69_s16 = sadd.s32 1, %s1227_s11 }
   0x5   : > { %s66_s17 = ssub.s32 %s1231_s12, %s1281_s15  ;;  %p79_p0 = scmp.ne.s32.totalorder %s1227_s11, %s1223_s10 }
   0x6   : > { %p67_p1 = scmp.eq.s32.totalorder %s66_s17, 0  ;;  %p80_p2 = scmp.eq.s32.totalorder %s1277_s13, 1 }
   0x7   : > { %p85_p3 = scmp.ne.s32.totalorder %s1223_s10, %s1219_s9  ;;  %p86_p4 = scmp.eq.s32.totalorder %s1036_s14, 1 }
   0x8   : > { %s1292_s18 = scalar_select %p67_p1, %s1227_s11, %s69_s16  }
   0x9   : > { %p1294_p5 = por %p80_p2, %p79_p0  ;;  %p1298_p6 = por %p86_p4, %p85_p3 }
   0xa   : > { %p1039_p7 = scmp.ge.s32.totalorder %s1231_s12, 1  ;;  %p115_p8 = scmp.lt.s32.totalorder %s1231_s12, 3 }
   0xc   : > { %p116_p9 = pnand %p1039_p7, %p115_p8 }
   0xd   : > { %s134_s21 = sand.u32 (!%p116_p9), 1, %s1223_s10   ;;  %p137_p10 = scmp.lt.s32.totalorder (!%p116_p9), %s1277_s13, 1 }
   0xe   : > { %119 = sbr.rel (%p116_p9) target bundleno = 617 (0x269), region = 28  ;;  %s1040_s24 = sshll.u32 (!%p116_p9), %s134_s21, 6 }
   0xf   : > { %s1330_s8 = scalar_lea.vmem (!%p116_p9), [#allocation5], %s1040_s24  ;;  %s1332_s14 = smov (!%p116_p9), 0  }
  0x13   : > { %vm143_vm0 = vcmask 7168   ;;  %v1309_v0 = vld [vmem:[%s1584_s1] sm:$0xf]  ;;  %v1237_v1 = vmov 0.0   ;;  %v1042_v2 = vld [vmem:[%s1584_s1 + $0x4] sm:$0xf] }
  0x14   : > { %144 = vst.msk [vmem:[#allocation3] sm:$0xff] %vm143_vm0, %v1237_v1  ;;  %v1043_v3 = vld [vmem:[%s1584_s1 + $0x8] sm:$0xf]  ;;  %v1044_v4 = vld [vmem:[%s1584_s1 + $0xc] sm:$0xf]  ;;  %s138_s3 = scalar_select %p137_p10, %s1277_s13, 1 }
  0x15   : > { %145 = vst.msk [vmem:[#allocation4] sm:$0xff] %vm143_vm0, %v1237_v1 }
  0x16   : > { %s1079_s4 = smul.u32 72, %s138_s3 }
  0x18   : > { %s1328_s7 = scalar_lea.vmem %s1583_s0, %s1079_s4 }
  0x19 LB: >> { %s1075_s16 = sshll.u32 %s1235_s14, 3  ;;  %s1238_s22 = smov 127   ;;  %vm178_vm1 = vcmask 130048   ;;  %vm257_vm2 = vcmask 64512   ;;  %s1235_s14 = sphi %s1332_s14, %s158_s14  }
  0x1a   : >> { %s161_s17 = scalar_lea.vmem %s1328_s7, %s1075_s16  ;;  %s256_s23 = scalar_lea.vmem [#allocation2], %s1075_s16 }
  0x1b   : >> { %v1077_v5 = vld [vmem:[%s161_s17 + $0x8] sm:$0xff]  ;;  %v1076_v6 = vld [vmem:[%s161_s17] sm:$0xff]  ;;  %s158_s14 = sadd.s32 1, %s1235_s14  }
  0x1c   : >> { %235 = vrot.lane.b32.xlu0 %v1077_v5, %s1238_s22  ;;  %228 = vmatpush.bf16.msra.mxu2 %v1077_v5  ;;  %v259_v23 = vld [vmem:[#allocation3] sm:$0xff]  ;;  %v265_v26 = vld [vmem:[#allocation4] sm:$0xff]  ;;  %p155_p11 = scmp.ge.s32.totalorder %s158_s14, 8  }
  0x1d   : >> { %206 = vmatpush.bf16.msra.mxu1 %v1076_v6  ;;  %vm356_vm6 = vcmask (%p155_p11), 1041409   ;;  %vm359_vm7 = vcmask (%p155_p11), 1042434   ;;  %vm362_vm8 = vcmask (%p155_p11), 1043459   ;;  %vm365_vm13 = vcmask (%p155_p11), 1044484  }
  0x1f   : >> { %1060 = vmatmul.msk.bf16.vlgmr.msra.gmra.mxu2 %vm178_vm1, %v1043_v3 }
  0x20   : >> { %1055 = vmatmul.msk.bf16.vlgmr.msra.gmra.mxu1 %vm178_vm1, %v1309_v0 }
  0x24   : >> { %175 = vrot.lane.b32.xlu0 %v1076_v6, %s1238_s22 }
  0x8e   : >> { %v236_v7 = vpop.permute.xlu0 %235 }
  0x8f   : >> { %248 = vmatpush.bf16.msra.mxu3 %v236_v7 }
  0x92   : >> { %1061 = vmatmul.msk.bf16.vlgmr.msra.gmra.mxu3 %vm178_vm1, %v1044_v4 }
  0x96   : >> { %v176_v8 = vpop.permute.xlu0 %175 }
  0x97   : >> { %189 = vmatpush.bf16.msra.mxu0 %v176_v8 }
  0x9a   : >> { %1054 = vmatmul.msk.bf16.vlgmr.msra.gmra.mxu0 %vm178_vm1, %v1042_v2 }
  0x9d   : >> { %v208_v9 = vpop.f32.mrf.mxu1 }
  0xa2   : >> { %v230_v10 = vpop.f32.mrf.mxu2 }
  0xa5   : >> { %v210_v11 = vpop.f32.mrf.mxu1 }
  0xaa   : >> { %v232_v12 = vpop.f32.mrf.mxu2 }
 0x115   : >> { %v250_v13 = vpop.f32.mrf.mxu3 }
 0x117   : >> { %v191_v14 = vpop.f32.mrf.mxu0 }
 0x118   : >> { %v209_v15 = vadd.f32 %v208_v9, %v191_v14 }
 0x11a   : >> { %v234_v16 = vadd.f32 %v230_v10, %v209_v15 }
 0x11c   : >> { %v254_v17 = vadd.f32 %v250_v13, %v234_v16 }
 0x11d   : >> { %v252_v18 = vpop.f32.mrf.mxu3 }
 0x11e   : >> { %v260_v19 = vsel %vm257_vm2, %v254_v17, 0.0  ;;  %258 = vst.msk [vmem:[%s256_s23] sm:$0xff] %vm257_vm2, %v254_v17  ;;  %v266_v21 = vmul.f32 %v254_v17, %v254_v17  ;;  %s1078_s23 = sshll.u32 (%p155_p11), %s1277_s13, 6 }
 0x11f   : >> { %v193_v20 = vpop.f32.mrf.mxu0  ;;  %261 = vadd.xlane.f32.xlu1 %v260_v19 }
 0x120   : >> { %v267_v22 = vsel %vm257_vm2, %v266_v21, 0.0 }
 0x125   : > { %v291_v59 = vld [vmem:[#allocation2] sm:$0x1] (%p155_p11)  ;;  %v292_v60 = vld [vmem:[#allocation2 + $0x8] sm:$0x1] (%p155_p11)  ;;  %v293_v61 = vld [vmem:[#allocation2 + $0x10] sm:$0x1] (%p155_p11) }
 0x126   : > { %v294_v62 = vld [vmem:[#allocation2 + $0x18] sm:$0x1] (%p155_p11)  ;;  %v295_v63 = vld [vmem:[#allocation2 + $0x20] sm:$0x1] (%p155_p11)  ;;  %v296_v0 = vld [vmem:[#allocation2 + $0x28] sm:$0x1] (%p155_p11) }
 0x127   : >> { %268 = vadd.xlane.f32.xlu1 %v267_v22  ;;  %v297_v1 = vld [vmem:[#allocation2 + $0x30] sm:$0x1] (%p155_p11)  ;;  %v298_v2 = vld [vmem:[#allocation2 + $0x38] sm:$0x1] (%p155_p11)  ;;  %v379_v22 = vld [vmem:[#allocation2 + $0x1] sm:$0x1] (%p155_p11) }
 0x192   : >> { %v262_v24 = vpop.xlane.xlu1 %261 }
 0x193   : >> { %v263_v25 = vadd.f32 %v262_v24, %v259_v23  ;;  %v380_v23 = vld [vmem:[#allocation2 + $0x9] sm:$0x1] (%p155_p11) }
 0x195   : >> { %264 = vst.msk [vmem:[#allocation3] sm:$0xff] %vm143_vm0, %v263_v25 }
 0x199   : > { %157 = sbr.rel (!%p155_p11) target bundleno = 25 (0x19), region = 83 }
 0x19a   : >> { %v269_v27 = vpop.xlane.xlu1 %268 }
 0x19b   : >> { %v270_v28 = vadd.f32 %v269_v27, %v265_v26 }
 0x19c   : > { %v272_v29 = vld [vmem:[#allocation3] sm:$0xff] (%p155_p11) }
 0x19d   : >> { %271 = vst.msk [vmem:[#allocation4] sm:$0xff] %vm143_vm0, %v270_v28  ;;  %v273_v31 = vmul.f32 (%p155_p11), 0.015625, %v272_v29 }
 0x19f   : > { %v276_v33 = vmul.f32 %v273_v31, %v273_v31  ;;  %v289_v41 = vsub.f32 0.0, %v273_v31 }
 0x1a4   : > { %v274_v30 = vld [vmem:[#allocation4] sm:$0xff] }
 0x1a5   : > { %v275_v32 = vmul.f32 0.015625, %v274_v30 }
 0x1a7   : > { %v277_v34 = vsub.f32 %v275_v32, %v276_v33 }
 0x1a9   : > { %v278_v35 = vadd.f32 1e-05, %v277_v34 }
 0x1ab   : > { %1163 = vrsqrt.f32 %v278_v35  ;;  %vm285_vm3 = vweird.f32 %v278_v35 }
 0x1b1   : > { %v1164_v36 = vpop.eup %1163 }
 0x1b2   : > { %v280_v37 = vmul.f32 %v1164_v36, %v278_v35  ;;  %vm286_vm4 = vweird.f32 %v1164_v36 }
 0x1b3   : > { %vm287_vm5 = vmor %vm285_vm3, %vm286_vm4  ;;  %vm368_vm3 = vcmask 1045509   ;;  %vm371_vm4 = vcmask 1046534  }
 0x1b4   : > { %v281_v38 = vmul.f32 %v1164_v36, %v280_v37 }
 0x1b6   : > { %v282_v39 = vmul.f32 0.5, %v281_v38 }
 0x1b8   : > { %v283_v40 = vsub.f32 1.5, %v282_v39 }
 0x1ba   : > { %v284_v42 = vmul.f32 %v1164_v36, %v283_v40  ;;  %v381_v40 = vld [vmem:[#allocation2 + $0x11] sm:$0x1] }
 0x1bc   : > { %v288_v43 = vsel %vm287_vm5, %v1164_v36, %v284_v42  ;;  %vm374_vm5 = vcmask 1047559   ;;  %v383_v42 = vld [vmem:[#allocation2 + $0x21] sm:$0x1] }
 0x1bd   : > { %1080 = vpush %v288_v43  ;;  %v290_v44 = vmul.f32 %v289_v41, %v288_v43  ;;  %v387_v45 = vrot.slane %v288_v43, 1  ;;  %v468_v46 = vrot.slane %v288_v43, 2  ;;  %v549_v49 = vrot.slane %v288_v43, 3  ;;  %v382_v41 = vld [vmem:[#allocation2 + $0x19] sm:$0x1] }
 0x1be   : > { %v630_v51 = vrot.slane %v288_v43, 4  ;;  %v711_v53 = vrot.slane %v288_v43, 5  ;;  %v792_v55 = vrot.slane %v288_v43, 6  ;;  %v873_v57 = vrot.slane %v288_v43, 7 }
 0x1bf   : > { %1082 = vpush %v290_v44  ;;  %v399_v47 = vrot.slane %v290_v44, 1  ;;  %v480_v48 = vrot.slane %v290_v44, 2  ;;  %v561_v50 = vrot.slane %v290_v44, 3  ;;  %v642_v52 = vrot.slane %v290_v44, 4 }
 0x1c0   : > { %1084 = vpush %v387_v45  ;;  %v723_v54 = vrot.slane %v290_v44, 5  ;;  %v804_v56 = vrot.slane %v290_v44, 6  ;;  %v885_v58 = vrot.slane %v290_v44, 7 }
 0x1c1   : > { %1086 = vpush %v399_v47  ;;  %v384_v47 = vld [vmem:[#allocation2 + $0x29] sm:$0x1] }
 0x1c2   : > { %1088 = vpush %v468_v46 }
 0x1c3   : > { %1090 = vpush %v480_v48  ;;  %v385_v48 = vld [vmem:[#allocation2 + $0x31] sm:$0x1] }
 0x1c4   : > { %1092 = vpush %v549_v49 }
 0x1c5   : > { %1094 = vpush %v561_v50 }
 0x1c6   : > { %1096 = vpush %v630_v51 }
 0x1c7   : > { %1098 = vpush %v642_v52 }
 0x1c8   : > { %1100 = vpush %v711_v53  ;;  %v386_v53 = vld [vmem:[#allocation2 + $0x39] sm:$0x1] }
 0x1c9   : > { %1102 = vpush %v723_v54 }
 0x1ca   : > { %1104 = vpush %v792_v55 }
 0x1cb   : > { %1106 = vpush %v804_v56 }
 0x1cc   : > { %1108 = vpush %v873_v57 }
 0x1cd   : > { %1110 = vpush %v885_v58 }
 0x1ee   : > { %s1081_s24 = spop %1080 }
 0x1ef   : > { %v301_v3 = vstv %s1081_s24 }
 0x1f0   : > { %v303_v4 = vmul.f32 %v301_v3, %v291_v59  ;;  %v304_v5 = vmul.f32 %v301_v3, %v292_v60  ;;  %v305_v6 = vmul.f32 %v301_v3, %v293_v61  ;;  %v306_v7 = vmul.f32 %v301_v3, %v294_v62  ;;  %s1083_s25 = spop %1082 }
 0x1f1   : > { %v307_v8 = vmul.f32 %v301_v3, %v295_v63  ;;  %v308_v9 = vmul.f32 %v301_v3, %v296_v0  ;;  %v309_v10 = vmul.f32 %v301_v3, %v297_v1  ;;  %v310_v11 = vmul.f32 %v301_v3, %v298_v2  ;;  %s1085_s26 = spop %1084 }
 0x1f2   : > { %v313_v12 = vstv %s1083_s25  ;;  %v1348_v13 = vstv %s1085_s26  ;;  %s1087_s27 = spop %1086  ;;  %s958_s25 = scalar_lea.hbm %s1585_s2, %s1078_s23 }
 0x1f3   : > { %v315_v14 = vadd.f32 %v313_v12, %v303_v4  ;;  %v316_v15 = vadd.f32 %v313_v12, %v304_v5  ;;  %v317_v16 = vadd.f32 %v313_v12, %v305_v6  ;;  %v318_v17 = vadd.f32 %v313_v12, %v306_v7  ;;  %s1089_s28 = spop %1088  ;;  %s959_s26 = sshll.u32 %s1330_s8, 4  ;;  %s960_s26 = int_to_ptr.vmem [resolvable:$true] %s959_s26 }
 0x1f4   : > { %v319_v18 = vadd.f32 %v313_v12, %v307_v8  ;;  %v320_v19 = vadd.f32 %v313_v12, %v308_v9  ;;  %v321_v20 = vadd.f32 %v313_v12, %v309_v10  ;;  %v322_v21 = vadd.f32 %v313_v12, %v310_v11  ;;  %s1091_s29 = spop %1090 }
 0x1f5   : > { %vm323_vm9 = vcmp.ge.f32.partialorder %v315_v14, 0.0  ;;  %vm324_vm10 = vcmp.ge.f32.partialorder %v316_v15, 0.0  ;;  %vm325_vm11 = vcmp.ge.f32.partialorder %v317_v16, 0.0  ;;  %vm326_vm12 = vcmp.ge.f32.partialorder %v318_v17, 0.0  ;;  %s1093_s30 = spop %1092 }
 0x1f6   : > { %vm327_vm14 = vcmp.ge.f32.partialorder %v319_v18, 0.0  ;;  %vm328_vm15 = vcmp.ge.f32.partialorder %v320_v19, 0.0  ;;  %vm329_vm0 = vcmp.ge.f32.partialorder %v321_v20, 0.0  ;;  %vm330_vm1 = vcmp.ge.f32.partialorder %v322_v21, 0.0  ;;  %s1095_s3 = spop %1094 }
 0x1f7   : > { %v331_v24 = vmul.f32 0.2, %v315_v14  ;;  %v332_v25 = vmul.f32 0.2, %v316_v15  ;;  %v333_v26 = vmul.f32 0.2, %v317_v16  ;;  %v391_v27 = vmul.f32 %v1348_v13, %v379_v22  ;;  %s1097_s4 = spop %1096 }
 0x1f8   : > { %v334_v28 = vmul.f32 0.2, %v318_v17  ;;  %v335_v29 = vmul.f32 0.2, %v319_v18  ;;  %v336_v30 = vmul.f32 0.2, %v320_v19  ;;  %v392_v31 = vmul.f32 %v1348_v13, %v380_v23  ;;  %s1099_s5 = spop %1098 }
 0x1f9   : > { %v337_v32 = vmul.f32 0.2, %v321_v20  ;;  %v338_v33 = vmul.f32 0.2, %v322_v21  ;;  %v339_v34 = vsel %vm323_vm9, %v315_v14, %v331_v24  ;;  %v340_v35 = vsel %vm324_vm10, %v316_v15, %v332_v25  ;;  %v461_v15 = vld [vmem:[#allocation2 + $0xa] sm:$0x1]  ;;  %s1101_s6 = spop %1100 }
 0x1fa   : > { %v341_v36 = vsel %vm325_vm11, %v317_v16, %v333_v26  ;;  %v342_v37 = vsel %vm326_vm12, %v318_v17, %v334_v28  ;;  %v343_v38 = vsel %vm327_vm14, %v319_v18, %v335_v29  ;;  %v344_v39 = vsel %vm328_vm15, %v320_v19, %v336_v30  ;;  %s1103_s7 = spop %1102 }
 0x1fb   : > { %v345_v43 = vsel %vm329_vm0, %v321_v20, %v337_v32  ;;  %v346_v44 = vsel %vm330_vm1, %v322_v21, %v338_v33  ;;  %v355_v45 = vrot.slane %v340_v35, 7  ;;  %v358_v46 = vrot.slane %v341_v36, 6  ;;  %v462_v32 = vld [vmem:[#allocation2 + $0x12] sm:$0x1]  ;;  %v463_v33 = vld [vmem:[#allocation2 + $0x1a] sm:$0x1]  ;;  %s1105_s14 = spop %1104 }
 0x1fc   : > { %v361_v49 = vrot.slane %v342_v37, 5  ;;  %v364_v50 = vrot.slane %v343_v38, 4  ;;  %v367_v51 = vrot.slane %v344_v39, 3  ;;  %v370_v52 = vrot.slane %v345_v43, 2  ;;  %v465_v39 = vld [vmem:[#allocation2 + $0x2a] sm:$0x1]  ;;  %s1107_s16 = spop %1106 }
 0x1fd   : > { %v357_v54 = vsel %vm356_vm6, %v355_v45, %v339_v34  ;;  %v373_v55 = vrot.slane %v346_v44, 1  ;;  %v393_v56 = vmul.f32 %v1348_v13, %v381_v40  ;;  %v394_v57 = vmul.f32 %v1348_v13, %v382_v41  ;;  %v464_v34 = vld [vmem:[#allocation2 + $0x22] sm:$0x1]  ;;  %v466_v40 = vld [vmem:[#allocation2 + $0x32] sm:$0x1]  ;;  %s1109_s17 = spop %1108 }
 0x1fe   : > { %v360_v58 = vsel %vm359_vm7, %v358_v46, %v357_v54  ;;  %v395_v59 = vmul.f32 %v1348_v13, %v383_v42  ;;  %v396_v60 = vmul.f32 %v1348_v13, %v384_v47  ;;  %v397_v61 = vmul.f32 %v1348_v13, %v385_v48  ;;  %v467_v45 = vld [vmem:[#allocation2 + $0x3a] sm:$0x1]  ;;  %s1111_s22 = spop %1110 }
 0x1ff   : > { %v363_v62 = vsel %vm362_vm8, %v361_v49, %v360_v58  ;;  %v398_v63 = vmul.f32 %v1348_v13, %v386_v53  ;;  %v401_v0 = vstv %s1087_s27  ;;  %v1369_v1 = vstv %s1089_s28  ;;  %v460_v13 = vld [vmem:[#allocation2 + $0x2] sm:$0x1]  ;;  %s961_s27 = sshll.u32 %s958_s25, 4  ;;  %s947_s28 = scalar_lea.sflag [#allocation6], %s134_s21  ;;  %s962_s27 = int_to_ptr.hbm [resolvable:$true] %s961_s27 }
 0x200   : > { %v366_v2 = vsel %vm365_vm13, %v364_v50, %v363_v62  ;;  %v403_v3 = vadd.f32 %v401_v0, %v391_v27  ;;  %v404_v4 = vadd.f32 %v401_v0, %v392_v31  ;;  %v405_v5 = vadd.f32 %v401_v0, %v393_v56 }
 0x201   : > { %v369_v6 = vsel %vm368_vm3, %v367_v51, %v366_v2  ;;  %v406_v7 = vadd.f32 %v401_v0, %v394_v57  ;;  %v407_v8 = vadd.f32 %v401_v0, %v395_v59  ;;  %v408_v9 = vadd.f32 %v401_v0, %v396_v60 }
 0x202   : > { %v372_v10 = vsel %vm371_vm4, %v370_v52, %v369_v6  ;;  %v409_v11 = vadd.f32 %v401_v0, %v397_v61  ;;  %v410_v12 = vadd.f32 %v401_v0, %v398_v63  ;;  %vm411_vm9 = vcmp.ge.f32.partialorder %v403_v3, 0.0 }
 0x203   : > { %v375_v14 = vsel %vm374_vm5, %v373_v55, %v372_v10  ;;  %vm412_vm10 = vcmp.ge.f32.partialorder %v404_v4, 0.0  ;;  %vm413_vm11 = vcmp.ge.f32.partialorder %v405_v5, 0.0  ;;  %vm414_vm12 = vcmp.ge.f32.partialorder %v406_v7, 0.0 }
 0x204   : > { %378 = vst.msk [vmem:[%s1330_s8] sm:$0xff] %vm257_vm2, %v375_v14  ;;  %vm415_vm14 = vcmp.ge.f32.partialorder %v407_v8, 0.0  ;;  %vm416_vm15 = vcmp.ge.f32.partialorder %v408_v9, 0.0  ;;  %vm417_vm0 = vcmp.ge.f32.partialorder %v409_v11, 0.0  ;;  %vm418_vm1 = vcmp.ge.f32.partialorder %v410_v12, 0.0 }
 0x205   : > { %v419_v16 = vmul.f32 0.2, %v403_v3  ;;  %v420_v17 = vmul.f32 0.2, %v404_v4  ;;  %v421_v18 = vmul.f32 0.2, %v405_v5  ;;  %v472_v19 = vmul.f32 %v1369_v1, %v460_v13 }
 0x206   : > { %v422_v20 = vmul.f32 0.2, %v406_v7  ;;  %v423_v21 = vmul.f32 0.2, %v407_v8  ;;  %v424_v22 = vmul.f32 0.2, %v408_v9  ;;  %v473_v23 = vmul.f32 %v1369_v1, %v461_v15 }
 0x207   : > { %v425_v24 = vmul.f32 0.2, %v409_v11  ;;  %v426_v25 = vmul.f32 0.2, %v410_v12  ;;  %v427_v26 = vsel %vm411_vm9, %v403_v3, %v419_v16  ;;  %v428_v27 = vsel %vm412_vm10, %v404_v4, %v420_v17 }
 0x208   : > { %v429_v28 = vsel %vm413_vm11, %v405_v5, %v421_v18  ;;  %v430_v29 = vsel %vm414_vm12, %v406_v7, %v422_v20  ;;  %v431_v30 = vsel %vm415_vm14, %v407_v8, %v423_v21  ;;  %v432_v31 = vsel %vm416_vm15, %v408_v9, %v424_v22  ;;  %v542_v7 = vld [vmem:[#allocation2 + $0xb] sm:$0x1] }
 0x209   : > { %v433_v35 = vsel %vm417_vm0, %v409_v11, %v425_v24  ;;  %v434_v36 = vsel %vm418_vm1, %v410_v12, %v426_v25  ;;  %v443_v37 = vrot.slane %v428_v27, 7  ;;  %v445_v38 = vrot.slane %v429_v28, 6  ;;  %v543_v24 = vld [vmem:[#allocation2 + $0x13] sm:$0x1]  ;;  %v544_v25 = vld [vmem:[#allocation2 + $0x1b] sm:$0x1] }
 0x20a   : > { %v447_v41 = vrot.slane %v430_v29, 5  ;;  %v449_v42 = vrot.slane %v431_v30, 4  ;;  %v451_v43 = vrot.slane %v432_v31, 3  ;;  %v453_v44 = vrot.slane %v433_v35, 2  ;;  %v546_v31 = vld [vmem:[#allocation2 + $0x2b] sm:$0x1] }
 0x20b   : > { %v444_v46 = vsel %vm356_vm6, %v443_v37, %v427_v26  ;;  %v455_v47 = vrot.slane %v434_v36, 1  ;;  %v474_v48 = vmul.f32 %v1369_v1, %v462_v32  ;;  %v475_v49 = vmul.f32 %v1369_v1, %v463_v33  ;;  %v545_v26 = vld [vmem:[#allocation2 + $0x23] sm:$0x1]  ;;  %v547_v32 = vld [vmem:[#allocation2 + $0x33] sm:$0x1] }
 0x20c   : > { %v446_v50 = vsel %vm359_vm7, %v445_v38, %v444_v46  ;;  %v476_v51 = vmul.f32 %v1369_v1, %v464_v34  ;;  %v477_v52 = vmul.f32 %v1369_v1, %v465_v39  ;;  %v478_v53 = vmul.f32 %v1369_v1, %v466_v40  ;;  %v548_v37 = vld [vmem:[#allocation2 + $0x3b] sm:$0x1] }
 0x20d   : > { %v448_v54 = vsel %vm362_vm8, %v447_v41, %v446_v50  ;;  %v479_v55 = vmul.f32 %v1369_v1, %v467_v45  ;;  %v482_v56 = vstv %s1091_s29  ;;  %v1396_v57 = vstv %s1093_s30  ;;  %v541_v1 = vld [vmem:[#allocation2 + $0x3] sm:$0x1]  ;;  %s1179_s29 = sshra.s32 %s962_s27, 4  ;;  %s1180_s29 = int_to_ptr.hbm [resolvable:$true] %s1179_s29 }
 0x20e   : > { %v450_v58 = vsel %vm365_vm13, %v449_v42, %v448_v54  ;;  %v484_v59 = vadd.f32 %v482_v56, %v472_v19  ;;  %v485_v60 = vadd.f32 %v482_v56, %v473_v23  ;;  %v486_v61 = vadd.f32 %v482_v56, %v474_v48  ;;  %s1181_s30 = scalar_lea.hbm %s1180_s29, 64  ;;  %p1186_p1 = scmp.lt.s32.totalorder %s1180_s29, %s1585_s2 }
 0x20f   : > { %v452_v62 = vsel %vm368_vm3, %v451_v43, %v450_v58  ;;  %v487_v63 = vadd.f32 %v482_v56, %v475_v49  ;;  %v488_v0 = vadd.f32 %v482_v56, %v476_v51  ;;  %v489_v2 = vadd.f32 %v482_v56, %v477_v52  ;;  %p1182_p12 = scmp.ne.s32.totalorder %s1180_s29, %s1181_s30 }
 0x210   : > { %v454_v3 = vsel %vm371_vm4, %v453_v44, %v452_v62  ;;  %v490_v4 = vadd.f32 %v482_v56, %v478_v53  ;;  %v491_v5 = vadd.f32 %v482_v56, %v479_v55  ;;  %vm492_vm9 = vcmp.ge.f32.partialorder %v484_v59, 0.0 }
 0x211   : > { %v456_v6 = vsel %vm374_vm5, %v455_v47, %v454_v3  ;;  %vm493_vm10 = vcmp.ge.f32.partialorder %v485_v60, 0.0  ;;  %vm494_vm11 = vcmp.ge.f32.partialorder %v486_v61, 0.0  ;;  %vm495_vm12 = vcmp.ge.f32.partialorder %v487_v63, 0.0  ;;  %p1183_p13 = pnand %p1182_p12, %p1294_p5 }
 0x212   : > { %1063 = vst.msk [vmem:[%s1330_s8 + $0x8] sm:$0xff] %vm257_vm2, %v456_v6  ;;  %vm496_vm14 = vcmp.ge.f32.partialorder %v488_v0, 0.0  ;;  %vm497_vm15 = vcmp.ge.f32.partialorder %v489_v2, 0.0  ;;  %vm498_vm0 = vcmp.ge.f32.partialorder %v490_v4, 0.0  ;;  %vm499_vm1 = vcmp.ge.f32.partialorder %v491_v5, 0.0 }
 0x213   : > { %v500_v8 = vmul.f32 0.2, %v484_v59  ;;  %v501_v9 = vmul.f32 0.2, %v485_v60  ;;  %v502_v10 = vmul.f32 0.2, %v486_v61  ;;  %v553_v11 = vmul.f32 %v1396_v57, %v541_v1  ;;  %p1184_p0 = pneg %p1183_p13 }
 0x214   : > { %v503_v12 = vmul.f32 0.2, %v487_v63  ;;  %v504_v13 = vmul.f32 0.2, %v488_v0  ;;  %v505_v14 = vmul.f32 0.2, %v489_v2  ;;  %v554_v15 = vmul.f32 %v1396_v57, %v542_v7 }
 0x215   : > { %v506_v16 = vmul.f32 0.2, %v490_v4  ;;  %v507_v17 = vmul.f32 0.2, %v491_v5  ;;  %v508_v18 = vsel %vm492_vm9, %v484_v59, %v500_v8  ;;  %v509_v19 = vsel %vm493_vm10, %v485_v60, %v501_v9 }
 0x216   : > { %v510_v20 = vsel %vm494_vm11, %v486_v61, %v502_v10  ;;  %v511_v21 = vsel %vm495_vm12, %v487_v63, %v503_v12  ;;  %v512_v22 = vsel %vm496_vm14, %v488_v0, %v504_v13  ;;  %v513_v23 = vsel %vm497_vm15, %v489_v2, %v505_v14  ;;  %v623_v63 = vld [vmem:[#allocation2 + $0xc] sm:$0x1] }
 0x217   : > { %v514_v27 = vsel %vm498_vm0, %v490_v4, %v506_v16  ;;  %v515_v28 = vsel %vm499_vm1, %v491_v5, %v507_v17  ;;  %v524_v29 = vrot.slane %v509_v19, 7  ;;  %v526_v30 = vrot.slane %v510_v20, 6  ;;  %v624_v16 = vld [vmem:[#allocation2 + $0x14] sm:$0x1]  ;;  %v625_v17 = vld [vmem:[#allocation2 + $0x1c] sm:$0x1] }
 0x218   : > { %v528_v33 = vrot.slane %v511_v21, 5  ;;  %v530_v34 = vrot.slane %v512_v22, 4  ;;  %v532_v35 = vrot.slane %v513_v23, 3  ;;  %v534_v36 = vrot.slane %v514_v27, 2  ;;  %v627_v23 = vld [vmem:[#allocation2 + $0x2c] sm:$0x1] }
 0x219   : > { %v525_v38 = vsel %vm356_vm6, %v524_v29, %v508_v18  ;;  %v536_v39 = vrot.slane %v515_v28, 1  ;;  %v555_v40 = vmul.f32 %v1396_v57, %v543_v24  ;;  %v556_v41 = vmul.f32 %v1396_v57, %v544_v25  ;;  %v626_v18 = vld [vmem:[#allocation2 + $0x24] sm:$0x1]  ;;  %v628_v24 = vld [vmem:[#allocation2 + $0x34] sm:$0x1] }
 0x21a   : > { %v527_v42 = vsel %vm359_vm7, %v526_v30, %v525_v38  ;;  %v557_v43 = vmul.f32 %v1396_v57, %v545_v26  ;;  %v558_v44 = vmul.f32 %v1396_v57, %v546_v31  ;;  %v559_v45 = vmul.f32 %v1396_v57, %v547_v32  ;;  %v629_v29 = vld [vmem:[#allocation2 + $0x3c] sm:$0x1] }
 0x21b   : > { %v529_v46 = vsel %vm362_vm8, %v528_v33, %v527_v42  ;;  %v560_v47 = vmul.f32 %v1396_v57, %v548_v37  ;;  %v563_v48 = vstv %s1095_s3  ;;  %v1423_v49 = vstv %s1097_s4  ;;  %v622_v57 = vld [vmem:[#allocation2 + $0x4] sm:$0x1] }
 0x21c   : > { %v531_v50 = vsel %vm365_vm13, %v530_v34, %v529_v46  ;;  %v565_v51 = vadd.f32 %v563_v48, %v553_v11  ;;  %v566_v52 = vadd.f32 %v563_v48, %v554_v15  ;;  %v567_v53 = vadd.f32 %v563_v48, %v555_v40 }
 0x21d   : > { %v533_v54 = vsel %vm368_vm3, %v532_v35, %v531_v50  ;;  %v568_v55 = vadd.f32 %v563_v48, %v556_v41  ;;  %v569_v56 = vadd.f32 %v563_v48, %v557_v43  ;;  %v570_v58 = vadd.f32 %v563_v48, %v558_v44 }
 0x21e   : > { %v535_v59 = vsel %vm371_vm4, %v534_v36, %v533_v54  ;;  %v571_v60 = vadd.f32 %v563_v48, %v559_v45  ;;  %v572_v61 = vadd.f32 %v563_v48, %v560_v47  ;;  %vm573_vm9 = vcmp.ge.f32.partialorder %v565_v51, 0.0 }
 0x21f   : > { %v537_v62 = vsel %vm374_vm5, %v536_v39, %v535_v59  ;;  %vm574_vm10 = vcmp.ge.f32.partialorder %v566_v52, 0.0  ;;  %vm575_vm11 = vcmp.ge.f32.partialorder %v567_v53, 0.0  ;;  %vm576_vm12 = vcmp.ge.f32.partialorder %v568_v55, 0.0 }
 0x220   : > { %1064 = vst.msk [vmem:[%s1330_s8 + $0x10] sm:$0xff] %vm257_vm2, %v537_v62  ;;  %vm577_vm14 = vcmp.ge.f32.partialorder %v569_v56, 0.0  ;;  %vm578_vm15 = vcmp.ge.f32.partialorder %v570_v58, 0.0  ;;  %vm579_vm0 = vcmp.ge.f32.partialorder %v571_v60, 0.0  ;;  %vm580_vm1 = vcmp.ge.f32.partialorder %v572_v61, 0.0 }
 0x221   : > { %v581_v0 = vmul.f32 0.2, %v565_v51  ;;  %v582_v2 = vmul.f32 0.2, %v566_v52  ;;  %v583_v3 = vmul.f32 0.2, %v567_v53  ;;  %v634_v4 = vmul.f32 %v1423_v49, %v622_v57 }
 0x222   : > { %v584_v5 = vmul.f32 0.2, %v568_v55  ;;  %v585_v1 = vmul.f32 0.2, %v569_v56  ;;  %v586_v6 = vmul.f32 0.2, %v570_v58  ;;  %v635_v7 = vmul.f32 %v1423_v49, %v623_v63 }
 0x223   : > { %v587_v8 = vmul.f32 0.2, %v571_v60  ;;  %v588_v9 = vmul.f32 0.2, %v572_v61  ;;  %v589_v10 = vsel %vm573_vm9, %v565_v51, %v581_v0  ;;  %v590_v11 = vsel %vm574_vm10, %v566_v52, %v582_v2 }
 0x224   : > { %v591_v12 = vsel %vm575_vm11, %v567_v53, %v583_v3  ;;  %v592_v13 = vsel %vm576_vm12, %v568_v55, %v584_v5  ;;  %v593_v14 = vsel %vm577_vm14, %v569_v56, %v585_v1  ;;  %v594_v15 = vsel %vm578_vm15, %v570_v58, %v586_v6  ;;  %v704_v55 = vld [vmem:[#allocation2 + $0xd] sm:$0x1] }
 0x225   : > { %v595_v19 = vsel %vm579_vm0, %v571_v60, %v587_v8  ;;  %v596_v20 = vsel %vm580_vm1, %v572_v61, %v588_v9  ;;  %v605_v21 = vrot.slane %v590_v11, 7  ;;  %v607_v22 = vrot.slane %v591_v12, 6  ;;  %v705_v8 = vld [vmem:[#allocation2 + $0x15] sm:$0x1]  ;;  %v706_v9 = vld [vmem:[#allocation2 + $0x1d] sm:$0x1] }
 0x226   : > { %v609_v25 = vrot.slane %v592_v13, 5  ;;  %v611_v26 = vrot.slane %v593_v14, 4  ;;  %v613_v27 = vrot.slane %v594_v15, 3  ;;  %v615_v28 = vrot.slane %v595_v19, 2  ;;  %v708_v15 = vld [vmem:[#allocation2 + $0x2d] sm:$0x1] }
 0x227   : > { %v606_v30 = vsel %vm356_vm6, %v605_v21, %v589_v10  ;;  %v617_v31 = vrot.slane %v596_v20, 1  ;;  %v636_v32 = vmul.f32 %v1423_v49, %v624_v16  ;;  %v637_v33 = vmul.f32 %v1423_v49, %v625_v17  ;;  %v707_v10 = vld [vmem:[#allocation2 + $0x25] sm:$0x1]  ;;  %v709_v16 = vld [vmem:[#allocation2 + $0x35] sm:$0x1] }
 0x228   : > { %v608_v34 = vsel %vm359_vm7, %v607_v22, %v606_v30  ;;  %v638_v35 = vmul.f32 %v1423_v49, %v626_v18  ;;  %v639_v36 = vmul.f32 %v1423_v49, %v627_v23  ;;  %v640_v37 = vmul.f32 %v1423_v49, %v628_v24  ;;  %v710_v21 = vld [vmem:[#allocation2 + $0x3d] sm:$0x1] }
 0x229   : > { %v610_v38 = vsel %vm362_vm8, %v609_v25, %v608_v34  ;;  %v641_v39 = vmul.f32 %v1423_v49, %v629_v29  ;;  %v644_v40 = vstv %s1099_s5  ;;  %v1450_v41 = vstv %s1101_s6  ;;  %v703_v49 = vld [vmem:[#allocation2 + $0x5] sm:$0x1]  ;;  %s1185_s5 = scalar_lea.hbm %s1585_s2, 128 }
 0x22a   : > { %v612_v42 = vsel %vm365_vm13, %v611_v26, %v610_v38  ;;  %v646_v43 = vadd.f32 %v644_v40, %v634_v4  ;;  %v647_v44 = vadd.f32 %v644_v40, %v635_v7  ;;  %v648_v45 = vadd.f32 %v644_v40, %v636_v32  ;;  %p1187_p2 = scmp.lt.s32.totalorder %s1185_s5, %s1181_s30 }
 0x22b   : > { %v614_v46 = vsel %vm368_vm3, %v613_v27, %v612_v42  ;;  %v649_v47 = vadd.f32 %v644_v40, %v637_v33  ;;  %v650_v48 = vadd.f32 %v644_v40, %v638_v35  ;;  %v651_v50 = vadd.f32 %v644_v40, %v639_v36 }
 0x22c   : > { %v616_v51 = vsel %vm371_vm4, %v615_v28, %v614_v46  ;;  %v652_v52 = vadd.f32 %v644_v40, %v640_v37  ;;  %v653_v53 = vadd.f32 %v644_v40, %v641_v39  ;;  %vm654_vm9 = vcmp.ge.f32.partialorder %v646_v43, 0.0  ;;  %p1188_p3 = por %p1187_p2, %p1186_p1 }
 0x22d   : > { %v618_v54 = vsel %vm374_vm5, %v617_v31, %v616_v51  ;;  %vm655_vm10 = vcmp.ge.f32.partialorder %v647_v44, 0.0  ;;  %vm656_vm11 = vcmp.ge.f32.partialorder %v648_v45, 0.0  ;;  %vm657_vm12 = vcmp.ge.f32.partialorder %v649_v47, 0.0 }
 0x22e   : > { %1065 = vst.msk [vmem:[%s1330_s8 + $0x18] sm:$0xff] %vm257_vm2, %v618_v54  ;;  %vm658_vm14 = vcmp.ge.f32.partialorder %v650_v48, 0.0  ;;  %vm659_vm15 = vcmp.ge.f32.partialorder %v651_v50, 0.0  ;;  %vm660_vm0 = vcmp.ge.f32.partialorder %v652_v52, 0.0  ;;  %vm661_vm1 = vcmp.ge.f32.partialorder %v653_v53, 0.0  ;;  %p1189_p4 = pnand %p1188_p3, %p1184_p0 }
 0x22f   : > { %v662_v56 = vmul.f32 0.2, %v646_v43  ;;  %v663_v58 = vmul.f32 0.2, %v647_v44  ;;  %v664_v59 = vmul.f32 0.2, %v648_v45  ;;  %v715_v60 = vmul.f32 %v1450_v41, %v703_v49 }
 0x230   : > { %v665_v61 = vmul.f32 0.2, %v649_v47  ;;  %v666_v57 = vmul.f32 0.2, %v650_v48  ;;  %v667_v62 = vmul.f32 0.2, %v651_v50  ;;  %v716_v63 = vmul.f32 %v1450_v41, %v704_v55 }
 0x231   : > { %v668_v0 = vmul.f32 0.2, %v652_v52  ;;  %v669_v2 = vmul.f32 0.2, %v653_v53  ;;  %v670_v3 = vsel %vm654_vm9, %v646_v43, %v662_v56  ;;  %v671_v4 = vsel %vm655_vm10, %v647_v44, %v663_v58 }
 0x232   : > { %v672_v5 = vsel %vm656_vm11, %v648_v45, %v664_v59  ;;  %v673_v1 = vsel %vm657_vm12, %v649_v47, %v665_v61  ;;  %v674_v6 = vsel %vm658_vm14, %v650_v48, %v666_v57  ;;  %v675_v7 = vsel %vm659_vm15, %v651_v50, %v667_v62  ;;  %v785_v47 = vld [vmem:[#allocation2 + $0xe] sm:$0x1] }
 0x233   : > { %v676_v11 = vsel %vm660_vm0, %v652_v52, %v668_v0  ;;  %v677_v12 = vsel %vm661_vm1, %v653_v53, %v669_v2  ;;  %v686_v13 = vrot.slane %v671_v4, 7  ;;  %v688_v14 = vrot.slane %v672_v5, 6  ;;  %v786_v0 = vld [vmem:[#allocation2 + $0x16] sm:$0x1]  ;;  %v787_v2 = vld [vmem:[#allocation2 + $0x1e] sm:$0x1] }
 0x234   : > { %v690_v17 = vrot.slane %v673_v1, 5  ;;  %v692_v18 = vrot.slane %v674_v6, 4  ;;  %v694_v19 = vrot.slane %v675_v7, 3  ;;  %v696_v20 = vrot.slane %v676_v11, 2  ;;  %v789_v7 = vld [vmem:[#allocation2 + $0x2e] sm:$0x1] }
 0x235   : > { %v687_v22 = vsel %vm356_vm6, %v686_v13, %v670_v3  ;;  %v698_v23 = vrot.slane %v677_v12, 1  ;;  %v717_v24 = vmul.f32 %v1450_v41, %v705_v8  ;;  %v718_v25 = vmul.f32 %v1450_v41, %v706_v9  ;;  %v788_v3 = vld [vmem:[#allocation2 + $0x26] sm:$0x1]  ;;  %v790_v8 = vld [vmem:[#allocation2 + $0x36] sm:$0x1] }
 0x236   : > { %v689_v26 = vsel %vm359_vm7, %v688_v14, %v687_v22  ;;  %v719_v27 = vmul.f32 %v1450_v41, %v707_v10  ;;  %v720_v28 = vmul.f32 %v1450_v41, %v708_v15  ;;  %v721_v29 = vmul.f32 %v1450_v41, %v709_v16  ;;  %v791_v13 = vld [vmem:[#allocation2 + $0x3e] sm:$0x1] }
 0x237   : > { %v691_v30 = vsel %vm362_vm8, %v690_v17, %v689_v26  ;;  %v722_v31 = vmul.f32 %v1450_v41, %v710_v21  ;;  %v725_v32 = vstv %s1103_s7  ;;  %v1477_v33 = vstv %s1105_s14  ;;  %v784_v41 = vld [vmem:[#allocation2 + $0x6] sm:$0x1] }
 0x238   : > { %v693_v34 = vsel %vm365_vm13, %v692_v18, %v691_v30  ;;  %v727_v35 = vadd.f32 %v725_v32, %v715_v60  ;;  %v728_v36 = vadd.f32 %v725_v32, %v716_v63  ;;  %v729_v37 = vadd.f32 %v725_v32, %v717_v24 }
 0x239   : > { %v695_v38 = vsel %vm368_vm3, %v694_v19, %v693_v34  ;;  %v730_v39 = vadd.f32 %v725_v32, %v718_v25  ;;  %v731_v40 = vadd.f32 %v725_v32, %v719_v27  ;;  %v732_v42 = vadd.f32 %v725_v32, %v720_v28 }
 0x23a   : > { %v697_v43 = vsel %vm371_vm4, %v696_v20, %v695_v38  ;;  %v733_v44 = vadd.f32 %v725_v32, %v721_v29  ;;  %v734_v45 = vadd.f32 %v725_v32, %v722_v31  ;;  %vm735_vm9 = vcmp.ge.f32.partialorder %v727_v35, 0.0  ;;  %v865_v38 = vld [vmem:[#allocation2 + $0x7] sm:$0x1] }
 0x23b   : > { %v699_v46 = vsel %vm374_vm5, %v698_v23, %v697_v43  ;;  %vm736_vm10 = vcmp.ge.f32.partialorder %v728_v36, 0.0  ;;  %vm737_vm11 = vcmp.ge.f32.partialorder %v729_v37, 0.0  ;;  %vm738_vm12 = vcmp.ge.f32.partialorder %v730_v39, 0.0 }
 0x23c   : > { %1066 = vst.msk [vmem:[%s1330_s8 + $0x20] sm:$0xff] %vm257_vm2, %v699_v46  ;;  %vm739_vm14 = vcmp.ge.f32.partialorder %v731_v40, 0.0  ;;  %vm740_vm15 = vcmp.ge.f32.partialorder %v732_v42, 0.0  ;;  %vm741_vm0 = vcmp.ge.f32.partialorder %v733_v44, 0.0  ;;  %vm742_vm1 = vcmp.ge.f32.partialorder %v734_v45, 0.0 }
 0x23d   : > { %v743_v48 = vmul.f32 0.2, %v727_v35  ;;  %v744_v50 = vmul.f32 0.2, %v728_v36  ;;  %v745_v51 = vmul.f32 0.2, %v729_v37  ;;  %v796_v52 = vmul.f32 %v1477_v33, %v784_v41 }
 0x23e   : > { %v746_v53 = vmul.f32 0.2, %v730_v39  ;;  %v747_v49 = vmul.f32 0.2, %v731_v40  ;;  %v748_v54 = vmul.f32 0.2, %v732_v42  ;;  %v797_v55 = vmul.f32 %v1477_v33, %v785_v47 }
 0x23f   : > { %v749_v56 = vmul.f32 0.2, %v733_v44  ;;  %v750_v58 = vmul.f32 0.2, %v734_v45  ;;  %v751_v59 = vsel %vm735_vm9, %v727_v35, %v743_v48  ;;  %v752_v60 = vsel %vm736_vm10, %v728_v36, %v744_v50 }
 0x240   : > { %v753_v61 = vsel %vm737_vm11, %v729_v37, %v745_v51  ;;  %v754_v57 = vsel %vm738_vm12, %v730_v39, %v746_v53  ;;  %v755_v62 = vsel %vm739_vm14, %v731_v40, %v747_v49  ;;  %v756_v63 = vsel %vm740_vm15, %v732_v42, %v748_v54  ;;  %v866_v39 = vld [vmem:[#allocation2 + $0xf] sm:$0x1]  ;;  %v867_v54 = vld [vmem:[#allocation2 + $0x17] sm:$0x1] }
 0x241   : > { %v757_v4 = vsel %vm741_vm0, %v733_v44, %v749_v56  ;;  %v758_v5 = vsel %vm742_vm1, %v734_v45, %v750_v58  ;;  %v767_v1 = vrot.slane %v752_v60, 7  ;;  %v769_v6 = vrot.slane %v753_v61, 6  ;;  %v869_v60 = vld [vmem:[#allocation2 + $0x27] sm:$0x1]  ;;  %v870_v61 = vld [vmem:[#allocation2 + $0x2f] sm:$0x1] }
 0x242   : > { %v771_v9 = vrot.slane %v754_v57, 5  ;;  %v773_v10 = vrot.slane %v755_v62, 4  ;;  %v775_v11 = vrot.slane %v756_v63, 3  ;;  %v777_v12 = vrot.slane %v757_v4, 2  ;;  %v872_v4 = vld [vmem:[#allocation2 + $0x3f] sm:$0x1] }
 0x243   : > { %v768_v14 = vsel %vm356_vm6, %v767_v1, %v751_v59  ;;  %v779_v15 = vrot.slane %v758_v5, 1  ;;  %v798_v16 = vmul.f32 %v1477_v33, %v786_v0  ;;  %v799_v17 = vmul.f32 %v1477_v33, %v787_v2 }
 0x244   : > { %v770_v18 = vsel %vm359_vm7, %v769_v6, %v768_v14  ;;  %v800_v19 = vmul.f32 %v1477_v33, %v788_v3  ;;  %v801_v20 = vmul.f32 %v1477_v33, %v789_v7  ;;  %v802_v21 = vmul.f32 %v1477_v33, %v790_v8  ;;  %v871_v3 = vld [vmem:[#allocation2 + $0x37] sm:$0x1] }
 0x245   : > { %v772_v22 = vsel %vm362_vm8, %v771_v9, %v770_v18  ;;  %v803_v23 = vmul.f32 %v1477_v33, %v791_v13  ;;  %v806_v24 = vstv %s1107_s16  ;;  %v1504_v25 = vstv %s1109_s17 }
 0x246   : > { %v774_v26 = vsel %vm365_vm13, %v773_v10, %v772_v22  ;;  %v808_v27 = vadd.f32 %v806_v24, %v796_v52  ;;  %v809_v28 = vadd.f32 %v806_v24, %v797_v55  ;;  %v810_v29 = vadd.f32 %v806_v24, %v798_v16  ;;  %v868_v55 = vld [vmem:[#allocation2 + $0x1f] sm:$0x1] }
 0x247   : > { %v776_v30 = vsel %vm368_vm3, %v775_v11, %v774_v26  ;;  %v811_v31 = vadd.f32 %v806_v24, %v799_v17  ;;  %v812_v32 = vadd.f32 %v806_v24, %v800_v19  ;;  %v813_v34 = vadd.f32 %v806_v24, %v801_v20 }
 0x248   : > { %v778_v35 = vsel %vm371_vm4, %v777_v12, %v776_v30  ;;  %v814_v36 = vadd.f32 %v806_v24, %v802_v21  ;;  %v815_v37 = vadd.f32 %v806_v24, %v803_v23  ;;  %vm816_vm9 = vcmp.ge.f32.partialorder %v808_v27, 0.0 }
 0x249   : > { %v780_v33 = vsel %vm374_vm5, %v779_v15, %v778_v35  ;;  %vm817_vm10 = vcmp.ge.f32.partialorder %v809_v28, 0.0  ;;  %vm818_vm11 = vcmp.ge.f32.partialorder %v810_v29, 0.0  ;;  %vm819_vm12 = vcmp.ge.f32.partialorder %v811_v31, 0.0 }
 0x24a   : > { %1067 = vst.msk [vmem:[%s1330_s8 + $0x28] sm:$0xff] %vm257_vm2, %v780_v33  ;;  %vm820_vm14 = vcmp.ge.f32.partialorder %v812_v32, 0.0  ;;  %vm821_vm15 = vcmp.ge.f32.partialorder %v813_v34, 0.0  ;;  %vm822_vm0 = vcmp.ge.f32.partialorder %v814_v36, 0.0  ;;  %vm823_vm1 = vcmp.ge.f32.partialorder %v815_v37, 0.0 }
 0x24b   : > { %v824_v40 = vmul.f32 0.2, %v808_v27  ;;  %v825_v42 = vmul.f32 0.2, %v809_v28  ;;  %v826_v43 = vmul.f32 0.2, %v810_v29  ;;  %v877_v50 = vmul.f32 %v1504_v25, %v865_v38 }
 0x24c   : > { %v827_v44 = vmul.f32 0.2, %v811_v31  ;;  %v828_v45 = vmul.f32 0.2, %v812_v32  ;;  %v829_v41 = vmul.f32 0.2, %v813_v34  ;;  %v878_v57 = vmul.f32 %v1504_v25, %v866_v39 }
 0x24d   : > { %v830_v46 = vmul.f32 0.2, %v814_v36  ;;  %v831_v47 = vmul.f32 0.2, %v815_v37  ;;  %v833_v48 = vsel %vm817_vm10, %v809_v28, %v825_v42  ;;  %v834_v51 = vsel %vm818_vm11, %v810_v29, %v826_v43 }
 0x24e   : > { %v835_v52 = vsel %vm819_vm12, %v811_v31, %v827_v44  ;;  %v836_v53 = vsel %vm820_vm14, %v812_v32, %v828_v45  ;;  %v837_v49 = vsel %vm821_vm15, %v813_v34, %v829_v41  ;;  %v848_v58 = vrot.slane %v833_v48, 7 }
 0x24f   : > { %v838_v56 = vsel %vm822_vm0, %v814_v36, %v830_v46  ;;  %v850_v59 = vrot.slane %v834_v51, 6  ;;  %v832_v62 = vsel %vm816_vm9, %v808_v27, %v824_v40  ;;  %v839_v63 = vsel %vm823_vm1, %v815_v37, %v831_v47 }
 0x250   : > { %v852_v0 = vrot.slane %v835_v52, 5  ;;  %v854_v2 = vrot.slane %v836_v53, 4  ;;  %v849_v5 = vsel %vm356_vm6, %v848_v58, %v832_v62  ;;  %v856_v1 = vrot.slane %v837_v49, 3 }
 0x251   : > { %v879_v6 = vmul.f32 %v1504_v25, %v867_v54  ;;  %v880_v7 = vmul.f32 %v1504_v25, %v868_v55  ;;  %v851_v8 = vsel %vm359_vm7, %v850_v59, %v849_v5  ;;  %v858_v9 = vrot.slane %v838_v56, 2 }
 0x252   : > { %v881_v10 = vmul.f32 %v1504_v25, %v869_v60  ;;  %v882_v11 = vmul.f32 %v1504_v25, %v870_v61  ;;  %v853_v12 = vsel %vm362_vm8, %v852_v0, %v851_v8  ;;  %v883_v13 = vmul.f32 %v1504_v25, %v871_v3 }
 0x253   : > { %v884_v14 = vmul.f32 %v1504_v25, %v872_v4  ;;  %v887_v15 = vstv %s1111_s22  ;;  %v855_v16 = vsel %vm365_vm13, %v854_v2, %v853_v12  ;;  %v860_v17 = vrot.slane %v839_v63, 1 }
 0x254   : > { %v890_v18 = vadd.f32 %v887_v15, %v878_v57  ;;  %v891_v19 = vadd.f32 %v887_v15, %v879_v6  ;;  %v857_v20 = vsel %vm368_vm3, %v856_v1, %v855_v16  ;;  %v889_v21 = vadd.f32 %v887_v15, %v877_v50 }
 0x255   : > { %v892_v22 = vadd.f32 %v887_v15, %v880_v7  ;;  %v893_v23 = vadd.f32 %v887_v15, %v881_v10  ;;  %v859_v24 = vsel %vm371_vm4, %v858_v9, %v857_v20  ;;  %v894_v26 = vadd.f32 %v887_v15, %v882_v11 }
 0x256   : > { %v861_v27 = vsel %vm374_vm5, %v860_v17, %v859_v24  ;;  %v895_v28 = vadd.f32 %v887_v15, %v883_v13  ;;  %v896_v29 = vadd.f32 %v887_v15, %v884_v14  ;;  %vm898_vm9 = vcmp.ge.f32.partialorder %v890_v18, 0.0 }
 0x257   : > { %1068 = vst.msk [vmem:[%s1330_s8 + $0x30] sm:$0xff] %vm257_vm2, %v861_v27  ;;  %vm899_vm10 = vcmp.ge.f32.partialorder %v891_v19, 0.0  ;;  %vm900_vm11 = vcmp.ge.f32.partialorder %v892_v22, 0.0  ;;  %vm901_vm12 = vcmp.ge.f32.partialorder %v893_v23, 0.0  ;;  %v905_v25 = vmul.f32 0.2, %v889_v21 }
 0x258   : > { %v906_v30 = vmul.f32 0.2, %v890_v18  ;;  %v907_v31 = vmul.f32 0.2, %v891_v19  ;;  %v908_v32 = vmul.f32 0.2, %v892_v22 }
 0x259   : > { %v909_v34 = vmul.f32 0.2, %v893_v23  ;;  %v910_v35 = vmul.f32 0.2, %v894_v26  ;;  %vm897_vm14 = vcmp.ge.f32.partialorder %v889_v21, 0.0  ;;  %vm902_vm15 = vcmp.ge.f32.partialorder %v894_v26, 0.0 }
 0x25a   : > { %v911_v36 = vmul.f32 0.2, %v895_v28  ;;  %v914_v37 = vsel %vm898_vm9, %v890_v18, %v906_v30  ;;  %vm903_vm0 = vcmp.ge.f32.partialorder %v895_v28, 0.0  ;;  %v912_v33 = vmul.f32 0.2, %v896_v29 }
 0x25b   : > { %v915_v38 = vsel %vm899_vm10, %v891_v19, %v907_v31  ;;  %v916_v39 = vsel %vm900_vm11, %v892_v22, %v908_v32  ;;  %vm904_vm1 = vcmp.ge.f32.partialorder %v896_v29, 0.0  ;;  %v917_v40 = vsel %vm901_vm12, %v893_v23, %v909_v34 }
 0x25c   : > { %v929_v42 = vrot.slane %v914_v37, 7  ;;  %v931_v43 = vrot.slane %v915_v38, 6  ;;  %v913_v44 = vsel %vm897_vm14, %v889_v21, %v905_v25  ;;  %v918_v45 = vsel %vm902_vm15, %v894_v26, %v910_v35 }
 0x25d   : > { %v919_v41 = vsel %vm903_vm0, %v895_v28, %v911_v36  ;;  %v933_v47 = vrot.slane %v916_v39, 5  ;;  %v920_v48 = vsel %vm904_vm1, %v896_v29, %v912_v33  ;;  %v935_v51 = vrot.slane %v917_v40, 4 }
 0x25e   : > { %v930_v46 = vsel %vm356_vm6, %v929_v42, %v913_v44  ;;  %v937_v53 = vrot.slane %v918_v45, 3  ;;  %v939_v54 = vrot.slane %v919_v41, 2  ;;  %v941_v56 = vrot.slane %v920_v48, 1 }
 0x25f   : > { %v932_v50 = vsel %vm359_vm7, %v931_v43, %v930_v46 }
 0x260   : > { %v934_v52 = vsel %vm362_vm8, %v933_v47, %v932_v50 }
 0x261   : > { %v936_v49 = vsel %vm365_vm13, %v935_v51, %v934_v52 }
 0x262   : > { %v938_v55 = vsel %vm368_vm3, %v937_v53, %v936_v49 }
 0x263   : > { %v940_v58 = vsel %vm371_vm4, %v939_v54, %v938_v55 }
 0x264   : > { %v942_v59 = vsel %vm374_vm5, %v941_v56, %v940_v58 }
 0x265   : > { %1069 = vst.msk [vmem:[%s1330_s8 + $0x38] sm:$0xff] %vm257_vm2, %v942_v59 }
 0x266   : > { %1192 = shalt.err (!%p1189_p4)
}
 0x267   : > { %s1239_s21 = smov 128   ;;  %s1240_s8 = smov 8  }
 0x268   : > { %1112 = dma.vmem_to_hbm [thread:$0]  (%p1294_p5), %s960_s26, 1024, %s962_s27, %s947_s28, %s1239_s21, %s1239_s21, %s1240_s8  }
 0x269 PF: > { %p1118_p7 = scmp.ge.s32.totalorder %s1231_s12, 2  ;;  %s976_s14 = sand.u32 1, %s1219_s9  }
 0x26a   : > { %s977_s16 = scalar_lea.sflag [#allocation6], %s976_s14 }
 0x26b   : > { %p1115_p8 = pnand %p1118_p7, %p1298_p6 }
 0x26d   : > { %p1116_p9 = pneg %p1115_p8 }
 0x26f   : > { %1214 = dma.done.wait (%p1116_p9), %s977_s16, 1024  }
 0x270   : > { %1216 = vsyncadd (%p1116_p9), %s977_s16, 4294966272  ;;  %p12_p10 = scmp.ge.s32.totalorder %s1281_s15, 4   ;;  %s1588_s9 = smov %s1223_s10 }
 0x271   : > { %s1589_s10 = smov %s1227_s11  ;;  %s1590_s11 = smov %s1292_s18 }
 0x272   : > { %s1591_s12 = smov %s1281_s15  ;;  %14 = sbr.rel (!%p12_p10) target bundleno = 3 (0x3), region = 94 }
 0x277   :  { %983 = vsyncpa [#allocation6], 1 }
 0x278   :  { %985 = vsyncpa [#allocation6 + $0x1], 1 }

</bundles_post_ra>
